<compile_context>
chip_gen: v6e
topology: v6e:2x2x1
jax: 0.10.0
libtpu: 0.0.40
codegen_flags: <defaults>
</compile_context>

<pallas_src>
import functools

import jax
import jax.numpy as jnp
from jax import lax
from jax.experimental import pallas as pl
from jax.experimental.pallas import tpu as pltpu

EPS = 1e-5          # nn.BatchNorm2d default eps
L = 4               # number of ConvBlocks in the module


def _round_up(v, m):
    return (v + m - 1) // m * m


# ------------------------------ fused Pallas kernel ------------------------------ #

def make_fused_kernel(N, H, W, C, C_pad):
    """Whole network: 4x(conv3x3 + BN + ReLU) + global avg-pool + softmax."""
    HW = H * W
    M = N * HW
    K = 9 * C_pad
    inv_M = 1.0 / M         # constant multiplies instead of divides
    inv_HW = 1.0 / HW

    def kernel(x_ref, w_ref, gb_ref, mask_ref, o_ref, taps_ref):
        # x_ref    : (C_pad, M)      lane-dense input, m = (n*H + y)*W + x
        # w_ref    : (L, C_pad, K)   stacked-tap conv weights, K = 9*C_pad
        # gb_ref   : (C_pad, 2*L)    BN gamma (col 2l) / beta (col 2l+1)
        # mask_ref : (K, M)          per-tap zero-padding / wrap validity mask
        # o_ref    : (C_pad, N)      softmax probabilities
        # taps_ref : (K, M)          VMEM scratch: the 9 rolled+masked taps
        a = x_ref[...]                      # activation stays in vregs / VMEM

        for l in range(L):
            # Build the stacked taps, then a single K=72 MXU dot per layer.
            # Roll convention: tap_t[c, m] = a[c, (m + off) mod M], off = dy*W + dx.
            # mask_ref kills image-edge taps AND the circular / cross-image wrap
            # introduced by the lane roll (tied to the m = (n*H + y)*W + x layout).
            for t in range(9):
                dy, dx = t // 3 - 1, t % 3 - 1
                off = dy * W + dx
                rows = pl.ds(t * C_pad, C_pad)
                if off == 0:                                # center tap: mask == 1
                    taps_ref[rows, :] = a
                else:
                    taps_ref[rows, :] = (
                        pltpu.roll(a, shift=(-off) % M, axis=1)
                        * mask_ref[rows, :])

            # Conv (bias dropped: exactly cancelled by training-mode BN below).
            acc = jnp.dot(w_ref[l], taps_ref[...],
                          preferred_element_type=jnp.float32)      # (C_pad, M)

            # BatchNorm2d (training mode: batch mean / biased variance), two-pass.
            mean = jnp.sum(acc, axis=1, keepdims=True) * inv_M
            d = acc - mean
            var = jnp.sum(d * d, axis=1, keepdims=True) * inv_M
            g = gb_ref[:, 2 * l:2 * l + 1]
            bt = gb_ref[:, 2 * l + 1:2 * l + 2]
            a = jnp.maximum(d * lax.rsqrt(var + EPS) * g + bt, 0.0)  # + ReLU

        # AvgPool2d((H, W)) + Softmax over channels, vectorized over the batch.
        pooled = jnp.concatenate(
            [jnp.sum(a[:, n * HW:(n + 1) * HW], axis=1, keepdims=True)
             for n in range(N)], axis=1) * inv_HW                   # (C_pad, N)
        if C_pad > C:                                   # ignore padded channels
            ch = lax.broadcasted_iota(jnp.int32, (C_pad, N), 0)
            pooled = jnp.where(ch < C, pooled, -jnp.inf)
        mx = jnp.max(pooled, axis=0, keepdims=True)
        e = jnp.exp(pooled - mx)
        if C_pad > C:
            e = jnp.where(ch < C, e, 0.0)
        denom = jnp.sum(e, axis=0, keepdims=True)
        # exact reciprocal on a (1, N) value keeps sum(probs) == 1 tight
        o_ref[...] = e * pl.reciprocal(denom, approx=False)

    return kernel


# --------------------------------- JAX wrapper --------------------------------- #

def _build_tap_masks(N, H, W, C_pad):
    """(9*C_pad, N*H*W) f32 validity masks, rows [t*C_pad:(t+1)*C_pad) = tap t."""
    y = jnp.arange(H).reshape(1, H, 1)
    x = jnp.arange(W).reshape(1, 1, W)
    rows = []
    for t in range(9):
        dy, dx = t // 3 - 1, t % 3 - 1
        ok = (y + dy >= 0) & (y + dy < H) & (x + dx >= 0) & (x + dx < W)
        row = (jnp.broadcast_to(ok, (N, H, W)).reshape(1, N * H * W)
               .astype(jnp.float32))
        rows.append(jnp.broadcast_to(row, (C_pad, N * H * W)))
    return jnp.concatenate(rows, axis=0)


def model_forward(x_nchw, packed, *, C, C_pad, H, W):
    """Forward pass equivalent to the PyTorch Model (fresh module -> BN in train mode)."""
    N, Cin = x_nchw.shape[0], x_nchw.shape[1]
    M = N * H * W
    K = 9 * C_pad
    w_all, gb = packed

    # Layout plumbing: NCHW -> lane-dense (C_pad, M) with m = (n*H + y)*W + x.
    x = x_nchw.astype(jnp.float32).transpose(1, 0, 2, 3).reshape(Cin, M)
    x = jnp.pad(x, ((0, C_pad - Cin), (0, 0)))
    masks = _build_tap_masks(N, H, W, C_pad)

    kernel = make_fused_kernel(N, H, W, C, C_pad)
    flops = int(L * 2 * C_pad * K * M + L * 12 * C_pad * M)
    bytes_accessed = int(4 * (x.size + w_all.size + gb.size + masks.size + C_pad * N))

    probs = pl.pallas_call(
        kernel,
        out_shape=jax.ShapeDtypeStruct((C_pad, N), jnp.float32),
        grid=(1,),
        in_specs=[
            pl.BlockSpec((C_pad, M), lambda i: (0, 0)),
            pl.BlockSpec((L, C_pad, K), lambda i: (0, 0, 0)),
            pl.BlockSpec((C_pad, 2 * L), lambda i: (0, 0)),
            pl.BlockSpec((K, M), lambda i: (0, 0)),
        ],
        out_specs=pl.BlockSpec((C_pad, N), lambda i: (0, 0)),
        scratch_shapes=[pltpu.VMEM((K, M), jnp.float32)],
        compiler_params=pltpu.CompilerParams(
            dimension_semantics=("arbitrary",)),
        cost_estimate=pl.CostEstimate(
            flops=flops,
            transcendentals=int(L * C_pad + N * C_pad),
            bytes_accessed=bytes_accessed),
    )(x, w_all, gb, masks)

    # (C_pad, N) -> (N, C, 1, 1): PyTorch output layout of AvgPool2d + Softmax.
    return probs.T[:, :C].reshape(N, C, 1, 1)


# ------------------------------ params & reference ------------------------------ #

def init_params(key, out_channels):
    """PyTorch-like Conv2d init (U(+-1/sqrt(fan_in))), BN gamma=1 / beta=0, OIHW weights."""
    params = []
    cin = 3
    for _ in range(L):
        key, k1, k2 = jax.random.split(key, 3)
        bound = float(cin * 9) ** -0.5
        w = jax.random.uniform(k1, (out_channels, cin, 3, 3), jnp.float32, -bound, bound)
        b = jax.random.uniform(k2, (out_channels,), jnp.float32, -bound, bound)
        gamma = jnp.ones((out_channels,), jnp.float32)
        beta = jnp.zeros((out_channels,), jnp.float32)
        params.append((w, b, gamma, beta))
        cin = out_channels
    return params


def pack_params(params, C_pad):
    """OIHW conv weights -> stacked-tap (L, C_pad, 9*C_pad); gamma/beta -> (C_pad, 2*L).

    Conv bias is intentionally NOT packed: with training-mode BatchNorm right
    after the conv, the per-channel bias cancels exactly.
    """
    w_l, g_l, bt_l = [], [], []
    for (w, b, g, bt) in params:
        Cout, Cin = w.shape[0], w.shape[1]
        # (Cout, Cin, 3, 3) -> per-tap (9, Cout, Cin), t = ky*3 + kx
        wt = jnp.transpose(w, (2, 3, 0, 1)).reshape(9, Cout, Cin)
        wt = jnp.pad(wt, ((0, 0), (0, C_pad - Cout), (0, C_pad - Cin)))
        # stack taps along K: column block t is W_t  -> (C_pad, 9*C_pad)
        wk = jnp.transpose(wt, (1, 0, 2)).reshape(C_pad, 9 * C_pad)
        w_l.append(wk)
        g_l.append(jnp.pad(g, (0, C_pad - Cout)))
        bt_l.append(jnp.pad(bt, (0, C_pad - Cout)))
    w_all = jnp.stack(w_l)                                   # (L, C_pad, 9*C_pad)
    gb = jnp.stack([col for l in range(L) for col in (g_l[l], bt_l[l])],
                   axis=1)                                   # (C_pad, 2*L)
    return w_all, gb


def reference_forward(x_nchw, params):
    """Pure-JAX/XLA reference matching the PyTorch module (training-mode BN, with bias)."""
    x = x_nchw.astype(jnp.float32)
    for (w, b, g, bt) in params:
        y = lax.conv_general_dilated(
            x, w, window_strides=(1, 1), padding=((1, 1), (1, 1)),
            dimension_numbers=("NCHW", "OIHW", "NCHW"),
            precision=lax.Precision.HIGHEST)
        y = y + b.reshape(1, -1, 1, 1)
        mean = jnp.mean(y, axis=(0, 2, 3), keepdims=True)
        var = jnp.mean(jnp.square(y - mean), axis=(0, 2, 3), keepdims=True)
        y = (y - mean) * lax.rsqrt(var + EPS) * g.reshape(1, -1, 1, 1) + bt.reshape(1, -1, 1, 1)
        x = jnp.maximum(y, 0.0)
    pooled = jnp.mean(x, axis=(2, 3), keepdims=True)    # AvgPool2d((H, W)) -> (N, C, 1, 1)
    return jax.nn.softmax(pooled, axis=1)               # nn.Softmax(dim=num_class=1)


if __name__ == "__main__":
    key = jax.random.PRNGKey(0)
    kx, kp = jax.random.split(key)

    # Model(height=16, width=16, out_channels=8, num_class=1); input has 3 channels.
    N, H, W = 2, 16, 16
    out_channels, num_class = 8, 1    # num_class=1 -> softmax over channel axis of (N,C,1,1)
    C_pad = _round_up(max(out_channels, 8), 8)

    x = jax.random.normal(kx, (N, 3, H, W), jnp.float32)
    params = init_params(kp, out_channels)
    packed = pack_params(params, C_pad)

    fwd = jax.jit(functools.partial(model_forward, C=out_channels, C_pad=C_pad, H=H, W=W))
    out = jax.block_until_ready(fwd(x, packed))

    assert out.shape == (N, out_channels, 1, 1), out.shape
    assert jnp.allclose(jnp.sum(out[:, :, 0, 0], axis=-1), 1.0, atol=1e-5)
    ref = reference_forward(x, params)
    err = float(jnp.max(jnp.abs(out - ref)))
    assert jnp.allclose(out, ref, atol=1e-2, rtol=1e-2), err
    print("KERNEL_OK")
</pallas_src>

<mosaic_0001>
module attributes {stable_mosaic.version = 11 : i64} {
  func.func @kernel(%arg0: i32, %arg1: memref<8x512xf32, #tpu.memory_space<vmem>>, %arg2: memref<4x8x72xf32, #tpu.memory_space<vmem>>, %arg3: memref<8x8xf32, #tpu.memory_space<vmem>>, %arg4: memref<72x512xf32, #tpu.memory_space<vmem>>, %arg5: memref<8x2xf32, #tpu.memory_space<vmem>>, %arg6: memref<72x512xf32, #tpu.memory_space<vmem>>) attributes {dimension_semantics = [#tpu.dimension_semantics<arbitrary>], iteration_bounds = array<i64: 1>, scalar_prefetch = 0 : i64, scratch_operands = 1 : i64, tpu.core_type = #tpu.core_type<tc>, window_params = [{pipeline_mode = #tpu.pipeline_mode<synchronous>, transform_indices = @transform_0, window_bounds = array<i64: 8, 512>}, {pipeline_mode = #tpu.pipeline_mode<synchronous>, transform_indices = @transform_1, window_bounds = array<i64: 4, 8, 72>}, {pipeline_mode = #tpu.pipeline_mode<synchronous>, transform_indices = @transform_2, window_bounds = array<i64: 8, 8>}, {pipeline_mode = #tpu.pipeline_mode<synchronous>, transform_indices = @transform_3, window_bounds = array<i64: 72, 512>}, {pipeline_mode = #tpu.pipeline_mode<synchronous>, transform_indices = @transform_4, window_bounds = array<i64: 8, 2>}]} {
    %c0 = arith.constant 0 : index
    %c0_0 = arith.constant 0 : index
    %0 = vector.load %arg1[%c0, %c0_0] : memref<8x512xf32, #tpu.memory_space<vmem>>, vector<8x512xf32>
    %c17_i32 = arith.constant 17 : i32
    %1 = tpu.dynamic_rotate %0 by %c17_i32 dim 1 : vector<8x512xf32>, i32 -> vector<8x512xf32>
    %c0_1 = arith.constant 0 : index
    %c0_2 = arith.constant 0 : index
    %2 = vector.load %arg4[%c0_1, %c0_2] : memref<72x512xf32, #tpu.memory_space<vmem>>, vector<8x512xf32>
    %3 = arith.mulf %1, %2 : vector<8x512xf32>
    %c0_3 = arith.constant 0 : index
    %c0_4 = arith.constant 0 : index
    %4 = vector.load %arg6[%c0_3, %c0_4] : memref<72x512xf32, #tpu.memory_space<vmem>>, vector<8x512xf32>
    tpu.vector_store %arg6[%c0_3, %c0_4], %3 {strides = array<i32>} : memref<72x512xf32, #tpu.memory_space<vmem>>, vector<8x512xf32>,
    %c16_i32 = arith.constant 16 : i32
    %5 = tpu.dynamic_rotate %0 by %c16_i32 dim 1 : vector<8x512xf32>, i32 -> vector<8x512xf32>
    %c8 = arith.constant 8 : index
    %c0_5 = arith.constant 0 : index
    %6 = vector.load %arg4[%c8, %c0_5] : memref<72x512xf32, #tpu.memory_space<vmem>>, vector<8x512xf32>
    %7 = arith.mulf %5, %6 : vector<8x512xf32>
    %c8_6 = arith.constant 8 : index
    %c0_7 = arith.constant 0 : index
    %8 = vector.load %arg6[%c8_6, %c0_7] : memref<72x512xf32, #tpu.memory_space<vmem>>, vector<8x512xf32>
    tpu.vector_store %arg6[%c8_6, %c0_7], %7 {strides = array<i32>} : memref<72x512xf32, #tpu.memory_space<vmem>>, vector<8x512xf32>,
    %c15_i32 = arith.constant 15 : i32
    %9 = tpu.dynamic_rotate %0 by %c15_i32 dim 1 : vector<8x512xf32>, i32 -> vector<8x512xf32>
    %c16 = arith.constant 16 : index
    %c0_8 = arith.constant 0 : index
    %10 = vector.load %arg4[%c16, %c0_8] : memref<72x512xf32, #tpu.memory_space<vmem>>, vector<8x512xf32>
    %11 = arith.mulf %9, %10 : vector<8x512xf32>
    %c16_9 = arith.constant 16 : index
    %c0_10 = arith.constant 0 : index
    %12 = vector.load %arg6[%c16_9, %c0_10] : memref<72x512xf32, #tpu.memory_space<vmem>>, vector<8x512xf32>
    tpu.vector_store %arg6[%c16_9, %c0_10], %11 {strides = array<i32>} : memref<72x512xf32, #tpu.memory_space<vmem>>, vector<8x512xf32>,
    %c1_i32 = arith.constant 1 : i32
    %13 = tpu.dynamic_rotate %0 by %c1_i32 dim 1 : vector<8x512xf32>, i32 -> vector<8x512xf32>
    %c24 = arith.constant 24 : index
    %c0_11 = arith.constant 0 : index
    %14 = vector.load %arg4[%c24, %c0_11] : memref<72x512xf32, #tpu.memory_space<vmem>>, vector<8x512xf32>
    %15 = arith.mulf %13, %14 : vector<8x512xf32>
    %c24_12 = arith.constant 24 : index
    %c0_13 = arith.constant 0 : index
    %16 = vector.load %arg6[%c24_12, %c0_13] : memref<72x512xf32, #tpu.memory_space<vmem>>, vector<8x512xf32>
    tpu.vector_store %arg6[%c24_12, %c0_13], %15 {strides = array<i32>} : memref<72x512xf32, #tpu.memory_space<vmem>>, vector<8x512xf32>,
    %c32 = arith.constant 32 : index
    %c0_14 = arith.constant 0 : index
    %17 = vector.load %arg6[%c32, %c0_14] : memref<72x512xf32, #tpu.memory_space<vmem>>, vector<8x512xf32>
    tpu.vector_store %arg6[%c32, %c0_14], %0 {strides = array<i32>} : memref<72x512xf32, #tpu.memory_space<vmem>>, vector<8x512xf32>,
    %c511_i32 = arith.constant 511 : i32
    %18 = tpu.dynamic_rotate %0 by %c511_i32 dim 1 : vector<8x512xf32>, i32 -> vector<8x512xf32>
    %c40 = arith.constant 40 : index
    %c0_15 = arith.constant 0 : index
    %19 = vector.load %arg4[%c40, %c0_15] : memref<72x512xf32, #tpu.memory_space<vmem>>, vector<8x512xf32>
    %20 = arith.mulf %18, %19 : vector<8x512xf32>
    %c40_16 = arith.constant 40 : index
    %c0_17 = arith.constant 0 : index
    %21 = vector.load %arg6[%c40_16, %c0_17] : memref<72x512xf32, #tpu.memory_space<vmem>>, vector<8x512xf32>
    tpu.vector_store %arg6[%c40_16, %c0_17], %20 {strides = array<i32>} : memref<72x512xf32, #tpu.memory_space<vmem>>, vector<8x512xf32>,
    %c497_i32 = arith.constant 497 : i32
    %22 = tpu.dynamic_rotate %0 by %c497_i32 dim 1 : vector<8x512xf32>, i32 -> vector<8x512xf32>
    %c48 = arith.constant 48 : index
    %c0_18 = arith.constant 0 : index
    %23 = vector.load %arg4[%c48, %c0_18] : memref<72x512xf32, #tpu.memory_space<vmem>>, vector<8x512xf32>
    %24 = arith.mulf %22, %23 : vector<8x512xf32>
    %c48_19 = arith.constant 48 : index
    %c0_20 = arith.constant 0 : index
    %25 = vector.load %arg6[%c48_19, %c0_20] : memref<72x512xf32, #tpu.memory_space<vmem>>, vector<8x512xf32>
    tpu.vector_store %arg6[%c48_19, %c0_20], %24 {strides = array<i32>} : memref<72x512xf32, #tpu.memory_space<vmem>>, vector<8x512xf32>,
    %c496_i32 = arith.constant 496 : i32
    %26 = tpu.dynamic_rotate %0 by %c496_i32 dim 1 : vector<8x512xf32>, i32 -> vector<8x512xf32>
    %c56 = arith.constant 56 : index
    %c0_21 = arith.constant 0 : index
    %27 = vector.load %arg4[%c56, %c0_21] : memref<72x512xf32, #tpu.memory_space<vmem>>, vector<8x512xf32>
    %28 = arith.mulf %26, %27 : vector<8x512xf32>
    %c56_22 = arith.constant 56 : index
    %c0_23 = arith.constant 0 : index
    %29 = vector.load %arg6[%c56_22, %c0_23] : memref<72x512xf32, #tpu.memory_space<vmem>>, vector<8x512xf32>
    tpu.vector_store %arg6[%c56_22, %c0_23], %28 {strides = array<i32>} : memref<72x512xf32, #tpu.memory_space<vmem>>, vector<8x512xf32>,
    %c495_i32 = arith.constant 495 : i32
    %30 = tpu.dynamic_rotate %0 by %c495_i32 dim 1 : vector<8x512xf32>, i32 -> vector<8x512xf32>
    %c64 = arith.constant 64 : index
    %c0_24 = arith.constant 0 : index
    %31 = vector.load %arg4[%c64, %c0_24] : memref<72x512xf32, #tpu.memory_space<vmem>>, vector<8x512xf32>
    %32 = arith.mulf %30, %31 : vector<8x512xf32>
    %c64_25 = arith.constant 64 : index
    %c0_26 = arith.constant 0 : index
    %33 = vector.load %arg6[%c64_25, %c0_26] : memref<72x512xf32, #tpu.memory_space<vmem>>, vector<8x512xf32>
    tpu.vector_store %arg6[%c64_25, %c0_26], %32 {strides = array<i32>} : memref<72x512xf32, #tpu.memory_space<vmem>>, vector<8x512xf32>,
    %c0_27 = arith.constant 0 : index
    %c0_28 = arith.constant 0 : index
    %c0_29 = arith.constant 0 : index
    %34 = vector.load %arg2[%c0_27, %c0_28, %c0_29] : memref<4x8x72xf32, #tpu.memory_space<vmem>>, vector<1x8x72xf32>
    %35 = vector.shape_cast %34 : vector<1x8x72xf32> to vector<8x72xf32>
    %c0_30 = arith.constant 0 : index
    %c0_31 = arith.constant 0 : index
    %36 = vector.load %arg6[%c0_30, %c0_31] : memref<72x512xf32, #tpu.memory_space<vmem>>, vector<72x512xf32>
    %cst = arith.constant dense<0.000000e+00> : vector<8x512xf32>
    %37 = tpu.matmul %35, %36, %cst {dimension_numbers = #tpu.dot_dimension_numbers<[1], [0], [0], [1], [0, 0, 1, 1], [], []>} : vector<8x72xf32>, vector<72x512xf32>, vector<8x512xf32> -> vector<8x512xf32>
    %cst_32 = arith.constant dense<0.000000e+00> : vector<8xf32>
    %38 = vector.multi_reduction <add>, %37, %cst_32 [1] : vector<8x512xf32> to vector<8xf32>
    %39 = vector.shape_cast %38 : vector<8xf32> to vector<8x1xf32>
    %cst_33 = arith.constant 0.001953125 : f32
    %40 = vector.broadcast %cst_33 : f32 to vector<8x1xf32>
    %41 = arith.mulf %39, %40 : vector<8x1xf32>
    %42 = vector.broadcast %41 : vector<8x1xf32> to vector<8x512xf32>
    %43 = arith.subf %37, %42 : vector<8x512xf32>
    %44 = arith.mulf %43, %43 : vector<8x512xf32>
    %cst_34 = arith.constant dense<0.000000e+00> : vector<8xf32>
    %45 = vector.multi_reduction <add>, %44, %cst_34 [1] : vector<8x512xf32> to vector<8xf32>
    %46 = vector.shape_cast %45 : vector<8xf32> to vector<8x1xf32>
    %cst_35 = arith.constant 0.001953125 : f32
    %47 = vector.broadcast %cst_35 : f32 to vector<8x1xf32>
    %48 = arith.mulf %46, %47 : vector<8x1xf32>
    %c0_36 = arith.constant 0 : index
    %c0_37 = arith.constant 0 : index
    %49 = vector.load %arg3[%c0_36, %c0_37] : memref<8x8xf32, #tpu.memory_space<vmem>>, vector<8x1xf32>
    %c0_38 = arith.constant 0 : index
    %c1 = arith.constant 1 : index
    %50 = vector.load %arg3[%c0_38, %c1] : memref<8x8xf32, #tpu.memory_space<vmem>>, vector<8x1xf32>
    %cst_39 = arith.constant 9.99999974E-6 : f32
    %51 = vector.broadcast %cst_39 : f32 to vector<8x1xf32>
    %52 = arith.addf %48, %51 : vector<8x1xf32>
    %53 = math.rsqrt %52 : vector<8x1xf32>
    %54 = vector.broadcast %53 : vector<8x1xf32> to vector<8x512xf32>
    %55 = arith.mulf %43, %54 : vector<8x512xf32>
    %56 = vector.broadcast %49 : vector<8x1xf32> to vector<8x512xf32>
    %57 = arith.mulf %55, %56 : vector<8x512xf32>
    %58 = vector.broadcast %50 : vector<8x1xf32> to vector<8x512xf32>
    %59 = arith.addf %57, %58 : vector<8x512xf32>
    %cst_40 = arith.constant 0.000000e+00 : f32
    %60 = vector.broadcast %cst_40 : f32 to vector<8x512xf32>
    %61 = arith.maximumf %59, %60 : vector<8x512xf32>
    %c17_i32_41 = arith.constant 17 : i32
    %62 = tpu.dynamic_rotate %61 by %c17_i32_41 dim 1 : vector<8x512xf32>, i32 -> vector<8x512xf32>
    %c0_42 = arith.constant 0 : index
    %c0_43 = arith.constant 0 : index
    %63 = vector.load %arg4[%c0_42, %c0_43] : memref<72x512xf32, #tpu.memory_space<vmem>>, vector<8x512xf32>
    %64 = arith.mulf %62, %63 : vector<8x512xf32>
    %c0_44 = arith.constant 0 : index
    %c0_45 = arith.constant 0 : index
    %65 = vector.load %arg6[%c0_44, %c0_45] : memref<72x512xf32, #tpu.memory_space<vmem>>, vector<8x512xf32>
    tpu.vector_store %arg6[%c0_44, %c0_45], %64 {strides = array<i32>} : memref<72x512xf32, #tpu.memory_space<vmem>>, vector<8x512xf32>,
    %c16_i32_46 = arith.constant 16 : i32
    %66 = tpu.dynamic_rotate %61 by %c16_i32_46 dim 1 : vector<8x512xf32>, i32 -> vector<8x512xf32>
    %c8_47 = arith.constant 8 : index
    %c0_48 = arith.constant 0 : index
    %67 = vector.load %arg4[%c8_47, %c0_48] : memref<72x512xf32, #tpu.memory_space<vmem>>, vector<8x512xf32>
    %68 = arith.mulf %66, %67 : vector<8x512xf32>
    %c8_49 = arith.constant 8 : index
    %c0_50 = arith.constant 0 : index
    %69 = vector.load %arg6[%c8_49, %c0_50] : memref<72x512xf32, #tpu.memory_space<vmem>>, vector<8x512xf32>
    tpu.vector_store %arg6[%c8_49, %c0_50], %68 {strides = array<i32>} : memref<72x512xf32, #tpu.memory_space<vmem>>, vector<8x512xf32>,
    %c15_i32_51 = arith.constant 15 : i32
    %70 = tpu.dynamic_rotate %61 by %c15_i32_51 dim 1 : vector<8x512xf32>, i32 -> vector<8x512xf32>
    %c16_52 = arith.constant 16 : index
    %c0_53 = arith.constant 0 : index
    %71 = vector.load %arg4[%c16_52, %c0_53] : memref<72x512xf32, #tpu.memory_space<vmem>>, vector<8x512xf32>
    %72 = arith.mulf %70, %71 : vector<8x512xf32>
    %c16_54 = arith.constant 16 : index
    %c0_55 = arith.constant 0 : index
    %73 = vector.load %arg6[%c16_54, %c0_55] : memref<72x512xf32, #tpu.memory_space<vmem>>, vector<8x512xf32>
    tpu.vector_store %arg6[%c16_54, %c0_55], %72 {strides = array<i32>} : memref<72x512xf32, #tpu.memory_space<vmem>>, vector<8x512xf32>,
    %c1_i32_56 = arith.constant 1 : i32
    %74 = tpu.dynamic_rotate %61 by %c1_i32_56 dim 1 : vector<8x512xf32>, i32 -> vector<8x512xf32>
    %c24_57 = arith.constant 24 : index
    %c0_58 = arith.constant 0 : index
    %75 = vector.load %arg4[%c24_57, %c0_58] : memref<72x512xf32, #tpu.memory_space<vmem>>, vector<8x512xf32>
    %76 = arith.mulf %74, %75 : vector<8x512xf32>
    %c24_59 = arith.constant 24 : index
    %c0_60 = arith.constant 0 : index
    %77 = vector.load %arg6[%c24_59, %c0_60] : memref<72x512xf32, #tpu.memory_space<vmem>>, vector<8x512xf32>
    tpu.vector_store %arg6[%c24_59, %c0_60], %76 {strides = array<i32>} : memref<72x512xf32, #tpu.memory_space<vmem>>, vector<8x512xf32>,
    %c32_61 = arith.constant 32 : index
    %c0_62 = arith.constant 0 : index
    %78 = vector.load %arg6[%c32_61, %c0_62] : memref<72x512xf32, #tpu.memory_space<vmem>>, vector<8x512xf32>
    tpu.vector_store %arg6[%c32_61, %c0_62], %61 {strides = array<i32>} : memref<72x512xf32, #tpu.memory_space<vmem>>, vector<8x512xf32>,
    %c511_i32_63 = arith.constant 511 : i32
    %79 = tpu.dynamic_rotate %61 by %c511_i32_63 dim 1 : vector<8x512xf32>, i32 -> vector<8x512xf32>
    %c40_64 = arith.constant 40 : index
    %c0_65 = arith.constant 0 : index
    %80 = vector.load %arg4[%c40_64, %c0_65] : memref<72x512xf32, #tpu.memory_space<vmem>>, vector<8x512xf32>
    %81 = arith.mulf %79, %80 : vector<8x512xf32>
    %c40_66 = arith.constant 40 : index
    %c0_67 = arith.constant 0 : index
    %82 = vector.load %arg6[%c40_66, %c0_67] : memref<72x512xf32, #tpu.memory_space<vmem>>, vector<8x512xf32>
    tpu.vector_store %arg6[%c40_66, %c0_67], %81 {strides = array<i32>} : memref<72x512xf32, #tpu.memory_space<vmem>>, vector<8x512xf32>,
    %c497_i32_68 = arith.constant 497 : i32
    %83 = tpu.dynamic_rotate %61 by %c497_i32_68 dim 1 : vector<8x512xf32>, i32 -> vector<8x512xf32>
    %c48_69 = arith.constant 48 : index
    %c0_70 = arith.constant 0 : index
    %84 = vector.load %arg4[%c48_69, %c0_70] : memref<72x512xf32, #tpu.memory_space<vmem>>, vector<8x512xf32>
    %85 = arith.mulf %83, %84 : vector<8x512xf32>
    %c48_71 = arith.constant 48 : index
    %c0_72 = arith.constant 0 : index
    %86 = vector.load %arg6[%c48_71, %c0_72] : memref<72x512xf32, #tpu.memory_space<vmem>>, vector<8x512xf32>
    tpu.vector_store %arg6[%c48_71, %c0_72], %85 {strides = array<i32>} : memref<72x512xf32, #tpu.memory_space<vmem>>, vector<8x512xf32>,
    %c496_i32_73 = arith.constant 496 : i32
    %87 = tpu.dynamic_rotate %61 by %c496_i32_73 dim 1 : vector<8x512xf32>, i32 -> vector<8x512xf32>
    %c56_74 = arith.constant 56 : index
    %c0_75 = arith.constant 0 : index
    %88 = vector.load %arg4[%c56_74, %c0_75] : memref<72x512xf32, #tpu.memory_space<vmem>>, vector<8x512xf32>
    %89 = arith.mulf %87, %88 : vector<8x512xf32>
    %c56_76 = arith.constant 56 : index
    %c0_77 = arith.constant 0 : index
    %90 = vector.load %arg6[%c56_76, %c0_77] : memref<72x512xf32, #tpu.memory_space<vmem>>, vector<8x512xf32>
    tpu.vector_store %arg6[%c56_76, %c0_77], %89 {strides = array<i32>} : memref<72x512xf32, #tpu.memory_space<vmem>>, vector<8x512xf32>,
    %c495_i32_78 = arith.constant 495 : i32
    %91 = tpu.dynamic_rotate %61 by %c495_i32_78 dim 1 : vector<8x512xf32>, i32 -> vector<8x512xf32>
    %c64_79 = arith.constant 64 : index
    %c0_80 = arith.constant 0 : index
    %92 = vector.load %arg4[%c64_79, %c0_80] : memref<72x512xf32, #tpu.memory_space<vmem>>, vector<8x512xf32>
    %93 = arith.mulf %91, %92 : vector<8x512xf32>
    %c64_81 = arith.constant 64 : index
    %c0_82 = arith.constant 0 : index
    %94 = vector.load %arg6[%c64_81, %c0_82] : memref<72x512xf32, #tpu.memory_space<vmem>>, vector<8x512xf32>
    tpu.vector_store %arg6[%c64_81, %c0_82], %93 {strides = array<i32>} : memref<72x512xf32, #tpu.memory_space<vmem>>, vector<8x512xf32>,
    %c1_83 = arith.constant 1 : index
    %c0_84 = arith.constant 0 : index
    %c0_85 = arith.constant 0 : index
    %95 = vector.load %arg2[%c1_83, %c0_84, %c0_85] : memref<4x8x72xf32, #tpu.memory_space<vmem>>, vector<1x8x72xf32>
    %96 = vector.shape_cast %95 : vector<1x8x72xf32> to vector<8x72xf32>
    %c0_86 = arith.constant 0 : index
    %c0_87 = arith.constant 0 : index
    %97 = vector.load %arg6[%c0_86, %c0_87] : memref<72x512xf32, #tpu.memory_space<vmem>>, vector<72x512xf32>
    %cst_88 = arith.constant dense<0.000000e+00> : vector<8x512xf32>
    %98 = tpu.matmul %96, %97, %cst_88 {dimension_numbers = #tpu.dot_dimension_numbers<[1], [0], [0], [1], [0, 0, 1, 1], [], []>} : vector<8x72xf32>, vector<72x512xf32>, vector<8x512xf32> -> vector<8x512xf32>
    %cst_89 = arith.constant dense<0.000000e+00> : vector<8xf32>
    %99 = vector.multi_reduction <add>, %98, %cst_89 [1] : vector<8x512xf32> to vector<8xf32>
    %100 = vector.shape_cast %99 : vector<8xf32> to vector<8x1xf32>
    %cst_90 = arith.constant 0.001953125 : f32
    %101 = vector.broadcast %cst_90 : f32 to vector<8x1xf32>
    %102 = arith.mulf %100, %101 : vector<8x1xf32>
    %103 = vector.broadcast %102 : vector<8x1xf32> to vector<8x512xf32>
    %104 = arith.subf %98, %103 : vector<8x512xf32>
    %105 = arith.mulf %104, %104 : vector<8x512xf32>
    %cst_91 = arith.constant dense<0.000000e+00> : vector<8xf32>
    %106 = vector.multi_reduction <add>, %105, %cst_91 [1] : vector<8x512xf32> to vector<8xf32>
    %107 = vector.shape_cast %106 : vector<8xf32> to vector<8x1xf32>
    %cst_92 = arith.constant 0.001953125 : f32
    %108 = vector.broadcast %cst_92 : f32 to vector<8x1xf32>
    %109 = arith.mulf %107, %108 : vector<8x1xf32>
    %c0_93 = arith.constant 0 : index
    %c2 = arith.constant 2 : index
    %110 = vector.load %arg3[%c0_93, %c2] : memref<8x8xf32, #tpu.memory_space<vmem>>, vector<8x1xf32>
    %c0_94 = arith.constant 0 : index
    %c3 = arith.constant 3 : index
    %111 = vector.load %arg3[%c0_94, %c3] : memref<8x8xf32, #tpu.memory_space<vmem>>, vector<8x1xf32>
    %cst_95 = arith.constant 9.99999974E-6 : f32
    %112 = vector.broadcast %cst_95 : f32 to vector<8x1xf32>
    %113 = arith.addf %109, %112 : vector<8x1xf32>
    %114 = math.rsqrt %113 : vector<8x1xf32>
    %115 = vector.broadcast %114 : vector<8x1xf32> to vector<8x512xf32>
    %116 = arith.mulf %104, %115 : vector<8x512xf32>
    %117 = vector.broadcast %110 : vector<8x1xf32> to vector<8x512xf32>
    %118 = arith.mulf %116, %117 : vector<8x512xf32>
    %119 = vector.broadcast %111 : vector<8x1xf32> to vector<8x512xf32>
    %120 = arith.addf %118, %119 : vector<8x512xf32>
    %cst_96 = arith.constant 0.000000e+00 : f32
    %121 = vector.broadcast %cst_96 : f32 to vector<8x512xf32>
    %122 = arith.maximumf %120, %121 : vector<8x512xf32>
    %c17_i32_97 = arith.constant 17 : i32
    %123 = tpu.dynamic_rotate %122 by %c17_i32_97 dim 1 : vector<8x512xf32>, i32 -> vector<8x512xf32>
    %c0_98 = arith.constant 0 : index
    %c0_99 = arith.constant 0 : index
    %124 = vector.load %arg4[%c0_98, %c0_99] : memref<72x512xf32, #tpu.memory_space<vmem>>, vector<8x512xf32>
    %125 = arith.mulf %123, %124 : vector<8x512xf32>
    %c0_100 = arith.constant 0 : index
    %c0_101 = arith.constant 0 : index
    %126 = vector.load %arg6[%c0_100, %c0_101] : memref<72x512xf32, #tpu.memory_space<vmem>>, vector<8x512xf32>
    tpu.vector_store %arg6[%c0_100, %c0_101], %125 {strides = array<i32>} : memref<72x512xf32, #tpu.memory_space<vmem>>, vector<8x512xf32>,
    %c16_i32_102 = arith.constant 16 : i32
    %127 = tpu.dynamic_rotate %122 by %c16_i32_102 dim 1 : vector<8x512xf32>, i32 -> vector<8x512xf32>
    %c8_103 = arith.constant 8 : index
    %c0_104 = arith.constant 0 : index
    %128 = vector.load %arg4[%c8_103, %c0_104] : memref<72x512xf32, #tpu.memory_space<vmem>>, vector<8x512xf32>
    %129 = arith.mulf %127, %128 : vector<8x512xf32>
    %c8_105 = arith.constant 8 : index
    %c0_106 = arith.constant 0 : index
    %130 = vector.load %arg6[%c8_105, %c0_106] : memref<72x512xf32, #tpu.memory_space<vmem>>, vector<8x512xf32>
    tpu.vector_store %arg6[%c8_105, %c0_106], %129 {strides = array<i32>} : memref<72x512xf32, #tpu.memory_space<vmem>>, vector<8x512xf32>,
    %c15_i32_107 = arith.constant 15 : i32
    %131 = tpu.dynamic_rotate %122 by %c15_i32_107 dim 1 : vector<8x512xf32>, i32 -> vector<8x512xf32>
    %c16_108 = arith.constant 16 : index
    %c0_109 = arith.constant 0 : index
    %132 = vector.load %arg4[%c16_108, %c0_109] : memref<72x512xf32, #tpu.memory_space<vmem>>, vector<8x512xf32>
    %133 = arith.mulf %131, %132 : vector<8x512xf32>
    %c16_110 = arith.constant 16 : index
    %c0_111 = arith.constant 0 : index
    %134 = vector.load %arg6[%c16_110, %c0_111] : memref<72x512xf32, #tpu.memory_space<vmem>>, vector<8x512xf32>
    tpu.vector_store %arg6[%c16_110, %c0_111], %133 {strides = array<i32>} : memref<72x512xf32, #tpu.memory_space<vmem>>, vector<8x512xf32>,
    %c1_i32_112 = arith.constant 1 : i32
    %135 = tpu.dynamic_rotate %122 by %c1_i32_112 dim 1 : vector<8x512xf32>, i32 -> vector<8x512xf32>
    %c24_113 = arith.constant 24 : index
    %c0_114 = arith.constant 0 : index
    %136 = vector.load %arg4[%c24_113, %c0_114] : memref<72x512xf32, #tpu.memory_space<vmem>>, vector<8x512xf32>
    %137 = arith.mulf %135, %136 : vector<8x512xf32>
    %c24_115 = arith.constant 24 : index
    %c0_116 = arith.constant 0 : index
    %138 = vector.load %arg6[%c24_115, %c0_116] : memref<72x512xf32, #tpu.memory_space<vmem>>, vector<8x512xf32>
    tpu.vector_store %arg6[%c24_115, %c0_116], %137 {strides = array<i32>} : memref<72x512xf32, #tpu.memory_space<vmem>>, vector<8x512xf32>,
    %c32_117 = arith.constant 32 : index
    %c0_118 = arith.constant 0 : index
    %139 = vector.load %arg6[%c32_117, %c0_118] : memref<72x512xf32, #tpu.memory_space<vmem>>, vector<8x512xf32>
    tpu.vector_store %arg6[%c32_117, %c0_118], %122 {strides = array<i32>} : memref<72x512xf32, #tpu.memory_space<vmem>>, vector<8x512xf32>,
    %c511_i32_119 = arith.constant 511 : i32
    %140 = tpu.dynamic_rotate %122 by %c511_i32_119 dim 1 : vector<8x512xf32>, i32 -> vector<8x512xf32>
    %c40_120 = arith.constant 40 : index
    %c0_121 = arith.constant 0 : index
    %141 = vector.load %arg4[%c40_120, %c0_121] : memref<72x512xf32, #tpu.memory_space<vmem>>, vector<8x512xf32>
    %142 = arith.mulf %140, %141 : vector<8x512xf32>
    %c40_122 = arith.constant 40 : index
    %c0_123 = arith.constant 0 : index
    %143 = vector.load %arg6[%c40_122, %c0_123] : memref<72x512xf32, #tpu.memory_space<vmem>>, vector<8x512xf32>
    tpu.vector_store %arg6[%c40_122, %c0_123], %142 {strides = array<i32>} : memref<72x512xf32, #tpu.memory_space<vmem>>, vector<8x512xf32>,
    %c497_i32_124 = arith.constant 497 : i32
    %144 = tpu.dynamic_rotate %122 by %c497_i32_124 dim 1 : vector<8x512xf32>, i32 -> vector<8x512xf32>
    %c48_125 = arith.constant 48 : index
    %c0_126 = arith.constant 0 : index
    %145 = vector.load %arg4[%c48_125, %c0_126] : memref<72x512xf32, #tpu.memory_space<vmem>>, vector<8x512xf32>
    %146 = arith.mulf %144, %145 : vector<8x512xf32>
    %c48_127 = arith.constant 48 : index
    %c0_128 = arith.constant 0 : index
    %147 = vector.load %arg6[%c48_127, %c0_128] : memref<72x512xf32, #tpu.memory_space<vmem>>, vector<8x512xf32>
    tpu.vector_store %arg6[%c48_127, %c0_128], %146 {strides = array<i32>} : memref<72x512xf32, #tpu.memory_space<vmem>>, vector<8x512xf32>,
    %c496_i32_129 = arith.constant 496 : i32
    %148 = tpu.dynamic_rotate %122 by %c496_i32_129 dim 1 : vector<8x512xf32>, i32 -> vector<8x512xf32>
    %c56_130 = arith.constant 56 : index
    %c0_131 = arith.constant 0 : index
    %149 = vector.load %arg4[%c56_130, %c0_131] : memref<72x512xf32, #tpu.memory_space<vmem>>, vector<8x512xf32>
    %150 = arith.mulf %148, %149 : vector<8x512xf32>
    %c56_132 = arith.constant 56 : index
    %c0_133 = arith.constant 0 : index
    %151 = vector.load %arg6[%c56_132, %c0_133] : memref<72x512xf32, #tpu.memory_space<vmem>>, vector<8x512xf32>
    tpu.vector_store %arg6[%c56_132, %c0_133], %150 {strides = array<i32>} : memref<72x512xf32, #tpu.memory_space<vmem>>, vector<8x512xf32>,
    %c495_i32_134 = arith.constant 495 : i32
    %152 = tpu.dynamic_rotate %122 by %c495_i32_134 dim 1 : vector<8x512xf32>, i32 -> vector<8x512xf32>
    %c64_135 = arith.constant 64 : index
    %c0_136 = arith.constant 0 : index
    %153 = vector.load %arg4[%c64_135, %c0_136] : memref<72x512xf32, #tpu.memory_space<vmem>>, vector<8x512xf32>
    %154 = arith.mulf %152, %153 : vector<8x512xf32>
    %c64_137 = arith.constant 64 : index
    %c0_138 = arith.constant 0 : index
    %155 = vector.load %arg6[%c64_137, %c0_138] : memref<72x512xf32, #tpu.memory_space<vmem>>, vector<8x512xf32>
    tpu.vector_store %arg6[%c64_137, %c0_138], %154 {strides = array<i32>} : memref<72x512xf32, #tpu.memory_space<vmem>>, vector<8x512xf32>,
    %c2_139 = arith.constant 2 : index
    %c0_140 = arith.constant 0 : index
    %c0_141 = arith.constant 0 : index
    %156 = vector.load %arg2[%c2_139, %c0_140, %c0_141] : memref<4x8x72xf32, #tpu.memory_space<vmem>>, vector<1x8x72xf32>
    %157 = vector.shape_cast %156 : vector<1x8x72xf32> to vector<8x72xf32>
    %c0_142 = arith.constant 0 : index
    %c0_143 = arith.constant 0 : index
    %158 = vector.load %arg6[%c0_142, %c0_143] : memref<72x512xf32, #tpu.memory_space<vmem>>, vector<72x512xf32>
    %cst_144 = arith.constant dense<0.000000e+00> : vector<8x512xf32>
    %159 = tpu.matmul %157, %158, %cst_144 {dimension_numbers = #tpu.dot_dimension_numbers<[1], [0], [0], [1], [0, 0, 1, 1], [], []>} : vector<8x72xf32>, vector<72x512xf32>, vector<8x512xf32> -> vector<8x512xf32>
    %cst_145 = arith.constant dense<0.000000e+00> : vector<8xf32>
    %160 = vector.multi_reduction <add>, %159, %cst_145 [1] : vector<8x512xf32> to vector<8xf32>
    %161 = vector.shape_cast %160 : vector<8xf32> to vector<8x1xf32>
    %cst_146 = arith.constant 0.001953125 : f32
    %162 = vector.broadcast %cst_146 : f32 to vector<8x1xf32>
    %163 = arith.mulf %161, %162 : vector<8x1xf32>
    %164 = vector.broadcast %163 : vector<8x1xf32> to vector<8x512xf32>
    %165 = arith.subf %159, %164 : vector<8x512xf32>
    %166 = arith.mulf %165, %165 : vector<8x512xf32>
    %cst_147 = arith.constant dense<0.000000e+00> : vector<8xf32>
    %167 = vector.multi_reduction <add>, %166, %cst_147 [1] : vector<8x512xf32> to vector<8xf32>
    %168 = vector.shape_cast %167 : vector<8xf32> to vector<8x1xf32>
    %cst_148 = arith.constant 0.001953125 : f32
    %169 = vector.broadcast %cst_148 : f32 to vector<8x1xf32>
    %170 = arith.mulf %168, %169 : vector<8x1xf32>
    %c0_149 = arith.constant 0 : index
    %c4 = arith.constant 4 : index
    %171 = vector.load %arg3[%c0_149, %c4] : memref<8x8xf32, #tpu.memory_space<vmem>>, vector<8x1xf32>
    %c0_150 = arith.constant 0 : index
    %c5 = arith.constant 5 : index
    %172 = vector.load %arg3[%c0_150, %c5] : memref<8x8xf32, #tpu.memory_space<vmem>>, vector<8x1xf32>
    %cst_151 = arith.constant 9.99999974E-6 : f32
    %173 = vector.broadcast %cst_151 : f32 to vector<8x1xf32>
    %174 = arith.addf %170, %173 : vector<8x1xf32>
    %175 = math.rsqrt %174 : vector<8x1xf32>
    %176 = vector.broadcast %175 : vector<8x1xf32> to vector<8x512xf32>
    %177 = arith.mulf %165, %176 : vector<8x512xf32>
    %178 = vector.broadcast %171 : vector<8x1xf32> to vector<8x512xf32>
    %179 = arith.mulf %177, %178 : vector<8x512xf32>
    %180 = vector.broadcast %172 : vector<8x1xf32> to vector<8x512xf32>
    %181 = arith.addf %179, %180 : vector<8x512xf32>
    %cst_152 = arith.constant 0.000000e+00 : f32
    %182 = vector.broadcast %cst_152 : f32 to vector<8x512xf32>
    %183 = arith.maximumf %181, %182 : vector<8x512xf32>
    %c17_i32_153 = arith.constant 17 : i32
    %184 = tpu.dynamic_rotate %183 by %c17_i32_153 dim 1 : vector<8x512xf32>, i32 -> vector<8x512xf32>
    %c0_154 = arith.constant 0 : index
    %c0_155 = arith.constant 0 : index
    %185 = vector.load %arg4[%c0_154, %c0_155] : memref<72x512xf32, #tpu.memory_space<vmem>>, vector<8x512xf32>
    %186 = arith.mulf %184, %185 : vector<8x512xf32>
    %c0_156 = arith.constant 0 : index
    %c0_157 = arith.constant 0 : index
    %187 = vector.load %arg6[%c0_156, %c0_157] : memref<72x512xf32, #tpu.memory_space<vmem>>, vector<8x512xf32>
    tpu.vector_store %arg6[%c0_156, %c0_157], %186 {strides = array<i32>} : memref<72x512xf32, #tpu.memory_space<vmem>>, vector<8x512xf32>,
    %c16_i32_158 = arith.constant 16 : i32
    %188 = tpu.dynamic_rotate %183 by %c16_i32_158 dim 1 : vector<8x512xf32>, i32 -> vector<8x512xf32>
    %c8_159 = arith.constant 8 : index
    %c0_160 = arith.constant 0 : index
    %189 = vector.load %arg4[%c8_159, %c0_160] : memref<72x512xf32, #tpu.memory_space<vmem>>, vector<8x512xf32>
    %190 = arith.mulf %188, %189 : vector<8x512xf32>
    %c8_161 = arith.constant 8 : index
    %c0_162 = arith.constant 0 : index
    %191 = vector.load %arg6[%c8_161, %c0_162] : memref<72x512xf32, #tpu.memory_space<vmem>>, vector<8x512xf32>
    tpu.vector_store %arg6[%c8_161, %c0_162], %190 {strides = array<i32>} : memref<72x512xf32, #tpu.memory_space<vmem>>, vector<8x512xf32>,
    %c15_i32_163 = arith.constant 15 : i32
    %192 = tpu.dynamic_rotate %183 by %c15_i32_163 dim 1 : vector<8x512xf32>, i32 -> vector<8x512xf32>
    %c16_164 = arith.constant 16 : index
    %c0_165 = arith.constant 0 : index
    %193 = vector.load %arg4[%c16_164, %c0_165] : memref<72x512xf32, #tpu.memory_space<vmem>>, vector<8x512xf32>
    %194 = arith.mulf %192, %193 : vector<8x512xf32>
    %c16_166 = arith.constant 16 : index
    %c0_167 = arith.constant 0 : index
    %195 = vector.load %arg6[%c16_166, %c0_167] : memref<72x512xf32, #tpu.memory_space<vmem>>, vector<8x512xf32>
    tpu.vector_store %arg6[%c16_166, %c0_167], %194 {strides = array<i32>} : memref<72x512xf32, #tpu.memory_space<vmem>>, vector<8x512xf32>,
    %c1_i32_168 = arith.constant 1 : i32
    %196 = tpu.dynamic_rotate %183 by %c1_i32_168 dim 1 : vector<8x512xf32>, i32 -> vector<8x512xf32>
    %c24_169 = arith.constant 24 : index
    %c0_170 = arith.constant 0 : index
    %197 = vector.load %arg4[%c24_169, %c0_170] : memref<72x512xf32, #tpu.memory_space<vmem>>, vector<8x512xf32>
    %198 = arith.mulf %196, %197 : vector<8x512xf32>
    %c24_171 = arith.constant 24 : index
    %c0_172 = arith.constant 0 : index
    %199 = vector.load %arg6[%c24_171, %c0_172] : memref<72x512xf32, #tpu.memory_space<vmem>>, vector<8x512xf32>
    tpu.vector_store %arg6[%c24_171, %c0_172], %198 {strides = array<i32>} : memref<72x512xf32, #tpu.memory_space<vmem>>, vector<8x512xf32>,
    %c32_173 = arith.constant 32 : index
    %c0_174 = arith.constant 0 : index
    %200 = vector.load %arg6[%c32_173, %c0_174] : memref<72x512xf32, #tpu.memory_space<vmem>>, vector<8x512xf32>
    tpu.vector_store %arg6[%c32_173, %c0_174], %183 {strides = array<i32>} : memref<72x512xf32, #tpu.memory_space<vmem>>, vector<8x512xf32>,
    %c511_i32_175 = arith.constant 511 : i32
    %201 = tpu.dynamic_rotate %183 by %c511_i32_175 dim 1 : vector<8x512xf32>, i32 -> vector<8x512xf32>
    %c40_176 = arith.constant 40 : index
    %c0_177 = arith.constant 0 : index
    %202 = vector.load %arg4[%c40_176, %c0_177] : memref<72x512xf32, #tpu.memory_space<vmem>>, vector<8x512xf32>
    %203 = arith.mulf %201, %202 : vector<8x512xf32>
    %c40_178 = arith.constant 40 : index
    %c0_179 = arith.constant 0 : index
    %204 = vector.load %arg6[%c40_178, %c0_179] : memref<72x512xf32, #tpu.memory_space<vmem>>, vector<8x512xf32>
    tpu.vector_store %arg6[%c40_178, %c0_179], %203 {strides = array<i32>} : memref<72x512xf32, #tpu.memory_space<vmem>>, vector<8x512xf32>,
    %c497_i32_180 = arith.constant 497 : i32
    %205 = tpu.dynamic_rotate %183 by %c497_i32_180 dim 1 : vector<8x512xf32>, i32 -> vector<8x512xf32>
    %c48_181 = arith.constant 48 : index
    %c0_182 = arith.constant 0 : index
    %206 = vector.load %arg4[%c48_181, %c0_182] : memref<72x512xf32, #tpu.memory_space<vmem>>, vector<8x512xf32>
    %207 = arith.mulf %205, %206 : vector<8x512xf32>
    %c48_183 = arith.constant 48 : index
    %c0_184 = arith.constant 0 : index
    %208 = vector.load %arg6[%c48_183, %c0_184] : memref<72x512xf32, #tpu.memory_space<vmem>>, vector<8x512xf32>
    tpu.vector_store %arg6[%c48_183, %c0_184], %207 {strides = array<i32>} : memref<72x512xf32, #tpu.memory_space<vmem>>, vector<8x512xf32>,
    %c496_i32_185 = arith.constant 496 : i32
    %209 = tpu.dynamic_rotate %183 by %c496_i32_185 dim 1 : vector<8x512xf32>, i32 -> vector<8x512xf32>
    %c56_186 = arith.constant 56 : index
    %c0_187 = arith.constant 0 : index
    %210 = vector.load %arg4[%c56_186, %c0_187] : memref<72x512xf32, #tpu.memory_space<vmem>>, vector<8x512xf32>
    %211 = arith.mulf %209, %210 : vector<8x512xf32>
    %c56_188 = arith.constant 56 : index
    %c0_189 = arith.constant 0 : index
    %212 = vector.load %arg6[%c56_188, %c0_189] : memref<72x512xf32, #tpu.memory_space<vmem>>, vector<8x512xf32>
    tpu.vector_store %arg6[%c56_188, %c0_189], %211 {strides = array<i32>} : memref<72x512xf32, #tpu.memory_space<vmem>>, vector<8x512xf32>,
    %c495_i32_190 = arith.constant 495 : i32
    %213 = tpu.dynamic_rotate %183 by %c495_i32_190 dim 1 : vector<8x512xf32>, i32 -> vector<8x512xf32>
    %c64_191 = arith.constant 64 : index
    %c0_192 = arith.constant 0 : index
    %214 = vector.load %arg4[%c64_191, %c0_192] : memref<72x512xf32, #tpu.memory_space<vmem>>, vector<8x512xf32>
    %215 = arith.mulf %213, %214 : vector<8x512xf32>
    %c64_193 = arith.constant 64 : index
    %c0_194 = arith.constant 0 : index
    %216 = vector.load %arg6[%c64_193, %c0_194] : memref<72x512xf32, #tpu.memory_space<vmem>>, vector<8x512xf32>
    tpu.vector_store %arg6[%c64_193, %c0_194], %215 {strides = array<i32>} : memref<72x512xf32, #tpu.memory_space<vmem>>, vector<8x512xf32>,
    %c3_195 = arith.constant 3 : index
    %c0_196 = arith.constant 0 : index
    %c0_197 = arith.constant 0 : index
    %217 = vector.load %arg2[%c3_195, %c0_196, %c0_197] : memref<4x8x72xf32, #tpu.memory_space<vmem>>, vector<1x8x72xf32>
    %218 = vector.shape_cast %217 : vector<1x8x72xf32> to vector<8x72xf32>
    %c0_198 = arith.constant 0 : index
    %c0_199 = arith.constant 0 : index
    %219 = vector.load %arg6[%c0_198, %c0_199] : memref<72x512xf32, #tpu.memory_space<vmem>>, vector<72x512xf32>
    %cst_200 = arith.constant dense<0.000000e+00> : vector<8x512xf32>
    %220 = tpu.matmul %218, %219, %cst_200 {dimension_numbers = #tpu.dot_dimension_numbers<[1], [0], [0], [1], [0, 0, 1, 1], [], []>} : vector<8x72xf32>, vector<72x512xf32>, vector<8x512xf32> -> vector<8x512xf32>
    %cst_201 = arith.constant dense<0.000000e+00> : vector<8xf32>
    %221 = vector.multi_reduction <add>, %220, %cst_201 [1] : vector<8x512xf32> to vector<8xf32>
    %222 = vector.shape_cast %221 : vector<8xf32> to vector<8x1xf32>
    %cst_202 = arith.constant 0.001953125 : f32
    %223 = vector.broadcast %cst_202 : f32 to vector<8x1xf32>
    %224 = arith.mulf %222, %223 : vector<8x1xf32>
    %225 = vector.broadcast %224 : vector<8x1xf32> to vector<8x512xf32>
    %226 = arith.subf %220, %225 : vector<8x512xf32>
    %227 = arith.mulf %226, %226 : vector<8x512xf32>
    %cst_203 = arith.constant dense<0.000000e+00> : vector<8xf32>
    %228 = vector.multi_reduction <add>, %227, %cst_203 [1] : vector<8x512xf32> to vector<8xf32>
    %229 = vector.shape_cast %228 : vector<8xf32> to vector<8x1xf32>
    %cst_204 = arith.constant 0.001953125 : f32
    %230 = vector.broadcast %cst_204 : f32 to vector<8x1xf32>
    %231 = arith.mulf %229, %230 : vector<8x1xf32>
    %c0_205 = arith.constant 0 : index
    %c6 = arith.constant 6 : index
    %232 = vector.load %arg3[%c0_205, %c6] : memref<8x8xf32, #tpu.memory_space<vmem>>, vector<8x1xf32>
    %c0_206 = arith.constant 0 : index
    %c7 = arith.constant 7 : index
    %233 = vector.load %arg3[%c0_206, %c7] : memref<8x8xf32, #tpu.memory_space<vmem>>, vector<8x1xf32>
    %cst_207 = arith.constant 9.99999974E-6 : f32
    %234 = vector.broadcast %cst_207 : f32 to vector<8x1xf32>
    %235 = arith.addf %231, %234 : vector<8x1xf32>
    %236 = math.rsqrt %235 : vector<8x1xf32>
    %237 = vector.broadcast %236 : vector<8x1xf32> to vector<8x512xf32>
    %238 = arith.mulf %226, %237 : vector<8x512xf32>
    %239 = vector.broadcast %232 : vector<8x1xf32> to vector<8x512xf32>
    %240 = arith.mulf %238, %239 : vector<8x512xf32>
    %241 = vector.broadcast %233 : vector<8x1xf32> to vector<8x512xf32>
    %242 = arith.addf %240, %241 : vector<8x512xf32>
    %cst_208 = arith.constant 0.000000e+00 : f32
    %243 = vector.broadcast %cst_208 : f32 to vector<8x512xf32>
    %244 = arith.maximumf %242, %243 : vector<8x512xf32>
    %245 = vector.extract_strided_slice %244 {offsets = [0, 0], sizes = [8, 256], strides = [1, 1]} : vector<8x512xf32> to vector<8x256xf32>
    %cst_209 = arith.constant dense<0.000000e+00> : vector<8xf32>
    %246 = vector.multi_reduction <add>, %245, %cst_209 [1] : vector<8x256xf32> to vector<8xf32>
    %247 = vector.shape_cast %246 : vector<8xf32> to vector<8x1xf32>
    %248 = vector.extract_strided_slice %244 {offsets = [0, 256], sizes = [8, 256], strides = [1, 1]} : vector<8x512xf32> to vector<8x256xf32>
    %cst_210 = arith.constant dense<0.000000e+00> : vector<8xf32>
    %249 = vector.multi_reduction <add>, %248, %cst_210 [1] : vector<8x256xf32> to vector<8xf32>
    %250 = vector.shape_cast %249 : vector<8xf32> to vector<8x1xf32>
    %251 = tpu.concatenate %247, %250 in 1 : vector<8x1xf32>, vector<8x1xf32> -> vector<8x2xf32>
    %cst_211 = arith.constant 3.906250e-03 : f32
    %252 = vector.broadcast %cst_211 : f32 to vector<8x2xf32>
    %253 = arith.mulf %251, %252 : vector<8x2xf32>
    %cst_212 = arith.constant dense<0xFF800000> : vector<2xf32>
    %254 = vector.multi_reduction <maximumf>, %253, %cst_212 [0] : vector<8x2xf32> to vector<2xf32>
    %255 = vector.shape_cast %254 : vector<2xf32> to vector<1x2xf32>
    %256 = vector.broadcast %255 : vector<1x2xf32> to vector<8x2xf32>
    %257 = arith.subf %253, %256 : vector<8x2xf32>
    %258 = math.exp %257 : vector<8x2xf32>
    %cst_213 = arith.constant dense<0.000000e+00> : vector<2xf32>
    %259 = vector.multi_reduction <add>, %258, %cst_213 [0] : vector<8x2xf32> to vector<2xf32>
    %260 = vector.shape_cast %259 : vector<2xf32> to vector<1x2xf32>
    %261 = tpu.reciprocal %260 : vector<1x2xf32> -> vector<1x2xf32>
    %262 = vector.broadcast %261 : vector<1x2xf32> to vector<8x2xf32>
    %263 = arith.mulf %258, %262 : vector<8x2xf32>
    %c0_214 = arith.constant 0 : index
    %c0_215 = arith.constant 0 : index
    %264 = vector.load %arg5[%c0_214, %c0_215] : memref<8x2xf32, #tpu.memory_space<vmem>>, vector<8x2xf32>
    tpu.vector_store %arg5[%c0_214, %c0_215], %263 {strides = array<i32>} : memref<8x2xf32, #tpu.memory_space<vmem>>, vector<8x2xf32>,
    return
  }
  func.func @transform_0(%arg0: i32) -> (i32, i32) {
    %c0_i32 = arith.constant 0 : i32
    %c0_i32_0 = arith.constant 0 : i32
    %c0_i32_1 = arith.constant 0 : i32
    return %c0_i32, %c0_i32_0 : i32, i32
  }
  func.func @transform_1(%arg0: i32) -> (i32, i32, i32) {
    %c0_i32 = arith.constant 0 : i32
    %c0_i32_0 = arith.constant 0 : i32
    %c0_i32_1 = arith.constant 0 : i32
    %c0_i32_2 = arith.constant 0 : i32
    return %c0_i32, %c0_i32_0, %c0_i32_1 : i32, i32, i32
  }
  func.func @transform_2(%arg0: i32) -> (i32, i32) {
    %c0_i32 = arith.constant 0 : i32
    %c0_i32_0 = arith.constant 0 : i32
    %c0_i32_1 = arith.constant 0 : i32
    return %c0_i32, %c0_i32_0 : i32, i32
  }
  func.func @transform_3(%arg0: i32) -> (i32, i32) {
    %c0_i32 = arith.constant 0 : i32
    %c0_i32_0 = arith.constant 0 : i32
    %c0_i32_1 = arith.constant 0 : i32
    return %c0_i32, %c0_i32_0 : i32, i32
  }
  func.func @transform_4(%arg0: i32) -> (i32, i32) {
    %c0_i32 = arith.constant 0 : i32
    %c0_i32_0 = arith.constant 0 : i32
    %c0_i32_1 = arith.constant 0 : i32
    return %c0_i32, %c0_i32_0 : i32, i32
  }
}

</mosaic_0001>

<bundles_post_ra>
// kernel: model_forward.1
= control target key start
LH: loop header
LB: loop body
LE: loop exit
PB: predicated region body
PF: predicated region fallthrough
CT: control target
= control target key end

     0   :  { %s1822_s19 = smov 111   ;;  %s1823_s22 = smov 112   ;;  %v1829_v4 = vmov 0.0   ;;  %v29_v5 = vlaneseq  ;;  %vm264_vm8 = vcmask 588800   ;;  %vm1745_vm9 = vcmask 7168   ;;  %s2909_s0 = inlined_call_operand.vmem [shape: f32[8,512], index: 0, kind: input, shape index: {}]   ;;  %s2910_s3 = inlined_call_operand.vmem [shape: f32[72,512], index: 3, kind: input, shape index: {}]   ;;  %s2911_s1 = inlined_call_operand.vmem [shape: f32[4,8,72], index: 1, kind: input, shape index: {}]   ;;  %s2912_s2 = inlined_call_operand.vmem [shape: f32[8,8], index: 2, kind: input, shape index: {}]   ;;  %s2913_s4 = inlined_call_operand.vmem [shape: f32[8,2], index: 4, kind: output, shape index: {}]  }
   0x1   :  { %v1867_v0 = vld [vmem:[%s2909_s0 + $0x8] sm:$0xff]  ;;  %v1872_v1 = vld [vmem:[%s2909_s0] sm:$0xff]  ;;  %v1881_v2 = vld [vmem:[%s2909_s0 + $0x10] sm:$0xff]  ;;  %s1824_s23 = smov 113   ;;  %s1825_s26 = smov 127   ;;  %332 = vmatprep.mubr.f32.mxu0 %v1829_v4  ;;  %403 = vmatprep.mubr.f32.mxu1 %v1829_v4  ;;  %vm1748_vm10 = vcmask 15360  }
   0x2   :  { %204 = vrot.lane.b32.xlu0 %v1867_v0, %s1822_s19  ;;  %202 = vrot.lane.b32.xlu1 %v1872_v1, %s1822_s19  ;;  %v1898_v3 = vld [vmem:[%s2909_s0 + $0x18] sm:$0xff]  ;;  %s1826_s0 = smov 1   ;;  %s1827_s27 = smov 15   ;;  %v1950_v6 = vand.u32 127, %v29_v5  ;;  %v1956_v9 = vld [vmem:[%s2910_s3 + $0x108] sm:$0xff] }
   0x3   :  { %s1828_s28 = smov 16   ;;  %s1830_s29 = smov 17   ;;  %v1963_v13 = vld [vmem:[%s2910_s3 + $0x100] sm:$0xff]  ;;  %v1973_v17 = vld [vmem:[%s2910_s3 + $0xe8] sm:$0xff]  ;;  %v2003_v31 = vld [vmem:[%s2910_s3 + $0x118] sm:$0xff] }
   0x4   :  { %vm210_vm0 = vcmp.lt.s32.totalorder %v1950_v6, 111  ;;  %vm185_vm1 = vcmp.lt.s32.totalorder %v1950_v6, 112  ;;  %v1978_v18 = vld [vmem:[%s2910_s3 + $0xe0] sm:$0xff]  ;;  %vm160_vm2 = vcmp.lt.s32.totalorder %v1950_v6, 113  ;;  %v1990_v25 = vld [vmem:[%s2910_s3 + $0xc8] sm:$0xff]  ;;  %v2008_v32 = vld [vmem:[%s2910_s3 + $0x110] sm:$0xff] }
   0x5   :  { %v1998_v30 = vld [vmem:[%s2910_s3 + $0xc0] sm:$0xff]  ;;  %vm135_vm3 = vcmp.lt.s32.totalorder %v1950_v6, 127  ;;  %v2023_v41 = vld [vmem:[%s2910_s3 + $0xa8] sm:$0xff]  ;;  %v2036_v47 = vld [vmem:[%s2910_s3 + $0xf8] sm:$0xff]  ;;  %vm106_vm4 = vcmp.lt.s32.totalorder %v1950_v6, 1  ;;  %vm81_vm5 = vcmp.lt.s32.totalorder %v1950_v6, 15 }
   0x6   :  { %206 = vrot.lane.b32.xlu0 %v1881_v2, %s1822_s19  ;;  %179 = vrot.lane.b32.xlu1 %v1867_v0, %s1823_s22  ;;  %v2031_v46 = vld [vmem:[%s2910_s3 + $0xa0] sm:$0xff]  ;;  %v2041_v48 = vld [vmem:[%s2910_s3 + $0xf0] sm:$0xff]  ;;  %vm56_vm6 = vcmp.lt.s32.totalorder %v1950_v6, 16  ;;  %vm31_vm7 = vcmp.lt.s32.totalorder %v1950_v6, 17  ;;  %v1837_v6 = vmov 6  }
   0x7   :  { %v2055_v57 = vld [vmem:[%s2910_s3 + $0xd8] sm:$0xff]  ;;  %v2060_v58 = vld [vmem:[%s2910_s3 + $0xd0] sm:$0xff] }
   0xa   :  { %181 = vrot.lane.b32.xlu0 %v1881_v2, %s1823_s22  ;;  %177 = vrot.lane.b32.xlu1 %v1872_v1, %s1823_s22 }
   0xe   :  { %154 = vrot.lane.b32.xlu0 %v1867_v0, %s1824_s23  ;;  %156 = vrot.lane.b32.xlu1 %v1881_v2, %s1824_s23 }
  0x12   :  { %208 = vrot.lane.b32.xlu0 %v1898_v3, %s1822_s19  ;;  %152 = vrot.lane.b32.xlu1 %v1872_v1, %s1824_s23 }
  0x16   :  { %129 = vrot.lane.b32.xlu0 %v1867_v0, %s1825_s26  ;;  %131 = vrot.lane.b32.xlu1 %v1881_v2, %s1825_s26 }
  0x1a   :  { %183 = vrot.lane.b32.xlu0 %v1898_v3, %s1823_s22  ;;  %127 = vrot.lane.b32.xlu1 %v1872_v1, %s1825_s26 }
  0x1e   :  { %158 = vrot.lane.b32.xlu0 %v1898_v3, %s1824_s23  ;;  %98 = vrot.lane.b32.xlu1 %v1872_v1, %s1826_s0 }
  0x22   :  { %100 = vrot.lane.b32.xlu0 %v1867_v0, %s1826_s0  ;;  %133 = vrot.lane.b32.xlu1 %v1898_v3, %s1825_s26 }
  0x26   :  { %104 = vrot.lane.b32.xlu0 %v1898_v3, %s1826_s0  ;;  %73 = vrot.lane.b32.xlu1 %v1872_v1, %s1827_s27 }
  0x2a   :  { %75 = vrot.lane.b32.xlu0 %v1867_v0, %s1827_s27  ;;  %79 = vrot.lane.b32.xlu1 %v1898_v3, %s1827_s27 }
  0x2e   :  { %48 = vrot.lane.b32.xlu0 %v1872_v1, %s1828_s28  ;;  %50 = vrot.lane.b32.xlu1 %v1867_v0, %s1828_s28 }
  0x32   :  { %102 = vrot.lane.b32.xlu0 %v1881_v2, %s1826_s0  ;;  %54 = vrot.lane.b32.xlu1 %v1898_v3, %s1828_s28 }
  0x36   :  { %21 = vrot.lane.b32.xlu0 %v1872_v1, %s1830_s29  ;;  %23 = vrot.lane.b32.xlu1 %v1867_v0, %s1830_s29 }
  0x3a   :  { %77 = vrot.lane.b32.xlu0 %v1881_v2, %s1827_s27  ;;  %27 = vrot.lane.b32.xlu1 %v1898_v3, %s1830_s29 }
  0x3e   :  { %52 = vrot.lane.b32.xlu0 %v1881_v2, %s1828_s28  ;;  %25 = vrot.lane.b32.xlu1 %v1881_v2, %s1830_s29 }
  0x74   :  { %v205_v7 = vpop.permute.xlu0 %204  ;;  %v203_v8 = vpop.permute.xlu1 %202 }
  0x75   :  { %v213_v12 = vsel %vm210_vm0, %v203_v8, %v205_v7 }
  0x76   :  { %v219_v16 = vmul.f32 %v1963_v13, %v213_v12 }
  0x78   :  { %v207_v10 = vpop.permute.xlu0 %206  ;;  %v180_v11 = vpop.permute.xlu1 %179 }
  0x79   :  { %v212_v14 = vsel %vm210_vm0, %v205_v7, %v207_v10  ;;  %v2074_v7 = vld [vmem:[%s2910_s3 + $0x68] sm:$0xff] }
  0x7a   :  { %v220_v15 = vmul.f32 %v1956_v9, %v212_v14 }
  0x7c   :  { %282 = vmatprep.subr.mxu0 %v220_v15  ;;  %v182_v19 = vpop.permute.xlu0 %181  ;;  %v178_v20 = vpop.permute.xlu1 %177 }
  0x7d   :  { %v187_v21 = vsel %vm185_vm1, %v180_v11, %v182_v19  ;;  %v188_v22 = vsel %vm185_vm1, %v178_v20, %v180_v11  ;;  %283 = vmatpush1.msra.mxu0 %v219_v16 }
  0x7e   :  { %v195_v23 = vmul.f32 %v1973_v17, %v187_v21  ;;  %v194_v24 = vmul.f32 %v1978_v18, %v188_v22 }
  0x80   :  { %v155_v26 = vpop.permute.xlu0 %154  ;;  %284 = vmatprep.subr.mxu0 %v195_v23  ;;  %v157_v27 = vpop.permute.xlu1 %156 }
  0x81   :  { %v162_v28 = vsel %vm160_vm2, %v155_v26, %v157_v27  ;;  %285 = vmatpush1.msra.mxu0 %v194_v24 }
  0x82   :  { %v170_v29 = vmul.f32 %v1990_v25, %v162_v28 }
  0x84   :  { %v209_v33 = vpop.permute.xlu0 %208  ;;  %286 = vmatprep.subr.mxu0 %v170_v29  ;;  %v153_v34 = vpop.permute.xlu1 %152 }
  0x85   :  { %v163_v35 = vsel %vm160_vm2, %v153_v34, %v155_v26  ;;  %v214_v36 = vsel %vm210_vm0, %v209_v33, %v203_v8  ;;  %v211_v37 = vsel %vm210_vm0, %v207_v10, %v209_v33  ;;  %v2079_v8 = vld [vmem:[%s2910_s3 + $0xb8] sm:$0xff]  ;;  %v2108_v26 = vld [vmem:[%s2910_s3 + $0x48] sm:$0xff] }
  0x86   :  { %v169_v38 = vmul.f32 %v1998_v30, %v163_v35  ;;  %v222_v39 = vmul.f32 %v2003_v31, %v214_v36  ;;  %v221_v40 = vmul.f32 %v2008_v32, %v211_v37  ;;  %v2126_v36 = vld [vmem:[%s2910_s3 + $0x28] sm:$0xff] }
  0x88   :  { %v130_v42 = vpop.permute.xlu0 %129  ;;  %287 = vmatpush1.msra.mxu0 %v169_v38  ;;  %353 = vmatprep.subr.mxu1 %v222_v39  ;;  %v132_v43 = vpop.permute.xlu1 %131 }
  0x89   :  { %v137_v44 = vsel %vm135_vm3, %v130_v42, %v132_v43  ;;  %354 = vmatpush1.msra.mxu1 %v221_v40  ;;  %v2134_v40 = vld [vmem:[%s2910_s3 + $0x20] sm:$0xff] }
  0x8a   :  { %v145_v45 = vmul.f32 %v2023_v41, %v137_v44 }
  0x8c   :  { %v184_v49 = vpop.permute.xlu0 %183  ;;  %288 = vmatprep.subr.mxu0 %v145_v45  ;;  %v128_v50 = vpop.permute.xlu1 %127 }
  0x8d   :  { %v186_v51 = vsel %vm185_vm1, %v182_v19, %v184_v49  ;;  %v189_v52 = vsel %vm185_vm1, %v184_v49, %v178_v20  ;;  %v138_v53 = vsel %vm135_vm3, %v128_v50, %v130_v42  ;;  %v2098_v20 = vld [vmem:[%s2910_s3 + $0x60] sm:$0xff]  ;;  %v2139_v42 = vld [vmem:[%s2910_s3 + $0x78] sm:$0xff] }
  0x8e   :  { %v144_v54 = vmul.f32 %v2031_v46, %v138_v53  ;;  %v197_v55 = vmul.f32 %v2036_v47, %v189_v52  ;;  %v196_v56 = vmul.f32 %v2041_v48, %v186_v51 }
  0x90   :  { %v159_v59 = vpop.permute.xlu0 %158  ;;  %289 = vmatpush1.msra.mxu0 %v144_v54  ;;  %355 = vmatprep.subr.mxu1 %v197_v55  ;;  %v99_v60 = vpop.permute.xlu1 %98  ;;  %v2159_v55 = vld [vmem:[%s2910_s3 + $0x8] sm:$0xff] }
  0x91   :  { %v161_v61 = vsel %vm160_vm2, %v157_v27, %v159_v59  ;;  %v164_v62 = vsel %vm160_vm2, %v159_v59, %v153_v34  ;;  %356 = vmatpush1.msra.mxu1 %v196_v56  ;;  %290 = vmatprep.subr.mxu0 %v1867_v0  ;;  %v2084_v0 = vld [vmem:[%s2910_s3 + $0xb0] sm:$0xff]  ;;  %v2113_v27 = vld [vmem:[%s2910_s3 + $0x40] sm:$0xff] }
  0x92   :  { %v172_v63 = vmul.f32 %v2055_v57, %v164_v62  ;;  %v171_v5 = vmul.f32 %v2060_v58, %v161_v61  ;;  %291 = vmatpush1.msra.mxu0 %v1872_v1  ;;  %v2167_v62 = vld [vmem:[%s2910_s3] sm:$0xff] }
  0x94   :  { %v101_v10 = vpop.permute.xlu0 %100  ;;  %357 = vmatprep.subr.mxu1 %v172_v63  ;;  %v134_v11 = vpop.permute.xlu1 %133  ;;  %v2172_v63 = vld [vmem:[%s2910_s3 + $0x58] sm:$0xff] }
  0x95   :  { %v109_v1 = vsel %vm106_vm4, %v99_v60, %v101_v10  ;;  %v136_v12 = vsel %vm135_vm3, %v132_v43, %v134_v11  ;;  %v139_v14 = vsel %vm135_vm3, %v134_v11, %v128_v50  ;;  %358 = vmatpush1.msra.mxu1 %v171_v5  ;;  %v2144_v43 = vld [vmem:[%s2910_s3 + $0x70] sm:$0xff] }
  0x96   :  { %v116_v15 = vmul.f32 %v2074_v7, %v109_v1  ;;  %v147_v16 = vmul.f32 %v2079_v8, %v139_v14  ;;  %v146_v19 = vmul.f32 %v2084_v0, %v136_v12  ;;  %v2177_v5 = vld [vmem:[%s2910_s3 + $0x50] sm:$0xff] }
  0x98   :  { %v105_v21 = vpop.permute.xlu0 %104  ;;  %292 = vmatprep.subr.mxu0 %v116_v15  ;;  %359 = vmatprep.subr.mxu1 %v147_v16  ;;  %v74_v22 = vpop.permute.xlu1 %73 }
  0x99   :  { %v110_v23 = vsel %vm106_vm4, %v105_v21, %v99_v60  ;;  %360 = vmatpush1.msra.mxu1 %v146_v19 }
  0x9a   :  { %v115_v24 = vmul.f32 %v2098_v20, %v110_v23  ;;  %361 = vmatprep.subr.mxu1 %v1898_v3  ;;  %v2199_v23 = vld [vmem:[%s2910_s3 + $0x30] sm:$0xff] }
  0x9b   :  { %362 = vmatpush1.msra.mxu1 %v1881_v2 }
  0x9c   :  { %v76_v28 = vpop.permute.xlu0 %75  ;;  %293 = vmatpush1.msra.mxu0 %v115_v24  ;;  %v80_v29 = vpop.permute.xlu1 %79 }
  0x9d   :  { %v84_v33 = vsel %vm81_vm5, %v74_v22, %v76_v28  ;;  %v85_v3 = vsel %vm81_vm5, %v80_v29, %v74_v22  ;;  %v2194_v22 = vld [vmem:[%s2910_s3 + $0x38] sm:$0xff] }
  0x9e   :  { %v91_v34 = vmul.f32 %v2108_v26, %v84_v33  ;;  %v90_v35 = vmul.f32 %v2113_v27, %v85_v3 }
  0xa0   :  { %v49_v2 = vpop.permute.xlu0 %48  ;;  %294 = vmatprep.subr.mxu0 %v91_v34  ;;  %v51_v37 = vpop.permute.xlu1 %50  ;;  %v2210_v34 = vld [vmem:[%s2910_s3 + $0x18] sm:$0xff] }
  0xa1   :  { %v59_v38 = vsel %vm56_vm6, %v49_v2, %v51_v37  ;;  %295 = vmatpush1.msra.mxu0 %v90_v35 }
  0xa2   :  { %v66_v39 = vmul.f32 %v2126_v36, %v59_v38 }
  0xa4   :  { %v103_v44 = vpop.permute.xlu0 %102  ;;  %296 = vmatprep.subr.mxu0 %v66_v39  ;;  %v55_v45 = vpop.permute.xlu1 %54 }
  0xa5   :  { %v107_v49 = vsel %vm106_vm4, %v103_v44, %v105_v21  ;;  %v108_v50 = vsel %vm106_vm4, %v101_v10, %v103_v44  ;;  %v60_v51 = vsel %vm56_vm6, %v55_v45, %v49_v2  ;;  %v227_v21 = vld [vmem:[%s2911_s1] sm:$0xff] }
  0xa6   :  { %v65_v52 = vmul.f32 %v2134_v40, %v60_v51  ;;  %v118_v53 = vmul.f32 %v2139_v42, %v107_v49  ;;  %v117_v54 = vmul.f32 %v2144_v43, %v108_v50 }
  0xa8   :  { %v22_v56 = vpop.permute.xlu0 %21  ;;  %297 = vmatpush1.msra.mxu0 %v65_v52  ;;  %363 = vmatprep.subr.mxu1 %v118_v53  ;;  %v24_v59 = vpop.permute.xlu1 %23 }
  0xa9   :  { %v34_v60 = vsel %vm31_vm7, %v22_v56, %v24_v59  ;;  %364 = vmatpush1.msra.mxu1 %v117_v54 }
  0xaa   :  { %v41_v61 = vmul.f32 %v2159_v55, %v34_v60  ;;  %v1832_v60 = vmov 1  }
  0xab   :  { %1802 = vset.pattern.permute.xlu1 %v1832_v60 }
  0xac   :  { %v78_v10 = vpop.permute.xlu0 %77  ;;  %298 = vmatprep.subr.mxu0 %v41_v61  ;;  %v28_v11 = vpop.permute.xlu1 %27 }
  0xad   :  { %v82_v1 = vsel %vm81_vm5, %v78_v10, %v80_v29  ;;  %v83_v12 = vsel %vm81_vm5, %v76_v28, %v78_v10  ;;  %v35_v14 = vsel %vm31_vm7, %v28_v11, %v22_v56  ;;  %v1831_v56 = vmov 0  }
  0xae   :  { %v40_v15 = vmul.f32 %v2167_v62, %v35_v14  ;;  %v93_v16 = vmul.f32 %v2172_v63, %v82_v1  ;;  %v92_v19 = vmul.f32 %v2177_v5, %v83_v12  ;;  %1801 = vset.pattern.permute.xlu0 %v1831_v56 }
  0xb0   :  { %v53_v24 = vpop.permute.xlu0 %52  ;;  %299 = vmatpush1.msra.mxu0 %v40_v15  ;;  %365 = vmatprep.subr.mxu1 %v93_v16  ;;  %v26_v28 = vpop.permute.xlu1 %25 }
  0xb1   :  { %v57_v29 = vsel %vm56_vm6, %v53_v24, %v55_v45  ;;  %v58_v33 = vsel %vm56_vm6, %v51_v37, %v53_v24  ;;  %v32_v3 = vsel %vm31_vm7, %v26_v28, %v28_v11  ;;  %366 = vmatpush1.msra.mxu1 %v92_v19  ;;  %v33_v35 = vsel %vm31_vm7, %v24_v59, %v26_v28  ;;  %v2220_v37 = vld [vmem:[%s2910_s3 + $0x10] sm:$0xff]  ;;  %v2230_v59 = vld [vmem:[%s2912_s2] sm:$0xff] }
  0xb2   :  { %1773 = vmatmul.mubr.msk.f32.vlgmr.msra.gmra.mxu0 %vm264_vm8, %v227_v21  ;;  %v68_v2 = vmul.f32 %v2194_v22, %v57_v29  ;;  %v67_v38 = vmul.f32 %v2199_v23, %v58_v33  ;;  %v43_v39 = vmul.f32 %v2210_v34, %v32_v3  ;;  %v42_v44 = vmul.f32 %v2220_v37, %v33_v35 }
  0xb3   :  { %759 = vmatprep.mubr.f32.mxu0 %v1829_v4 }
  0xb4   :  { %367 = vmatprep.subr.mxu1 %v68_v2 }
  0xb5   :  { %368 = vmatpush1.msra.mxu1 %v67_v38 }
  0xb6   :  { %369 = vmatprep.subr.mxu1 %v43_v39 }
  0xb7   :  { %370 = vmatpush1.msra.mxu1 %v42_v44 }
  0xb8   :  { %1774 = vmatmul.mubr.msk.f32.vlgmr.msra.gmra.mxu1 %vm264_vm8, %v227_v21 }
  0xb9   :  { %830 = vmatprep.mubr.f32.mxu1 %v1829_v4 }
 0x172   :  { %v334_v45 = vpop.f32.mrf.mxu0 }
 0x174   :  { %v336_v49 = vpop.f32.mrf.mxu0 }
 0x175   :  { %v410_v50 = vadd.f32 %v336_v49, %v334_v45 }
 0x178   :  { %v405_v51 = vpop.f32.mrf.mxu1 }
 0x179   :  { %v411_v52 = vadd.f32 %v410_v50, %v405_v51 }
 0x17a   :  { %v407_v53 = vpop.f32.mrf.mxu1 }
 0x17b   :  { %v412_v54 = vadd.f32 %v411_v52, %v407_v53 }
 0x17d   :  { %413 = vadd.xlane.f32.xlu0 %v412_v54 }
 0x193   :  { %439 = vperm.xlu0 %1801, %v2230_v59  }
 0x206   :  { %v414_v61 = vpop.xlane.xlu0 %413 }
 0x207   :  { %v415_v10 = vmul.f32 0.001953125, %v414_v61 }
 0x209   :  { %v416_v11 = vsub.f32 %v334_v45, %v415_v10  ;;  %v417_v1 = vsub.f32 %v336_v49, %v415_v10  ;;  %v418_v12 = vsub.f32 %v405_v51, %v415_v10  ;;  %v419_v14 = vsub.f32 %v407_v53, %v415_v10 }
 0x20b   :  { %v420_v15 = vmul.f32 %v416_v11, %v416_v11  ;;  %v421_v16 = vmul.f32 %v417_v1, %v417_v1  ;;  %v422_v19 = vmul.f32 %v418_v12, %v418_v12  ;;  %v423_v24 = vmul.f32 %v419_v14, %v419_v14 }
 0x20d   :  { %v424_v21 = vadd.f32 %v421_v16, %v420_v15 }
 0x20e   :  { %v440_v38 = vpop.permute.xlu0 %439 }
 0x20f   :  { %v425_v28 = vadd.f32 %v424_v21, %v422_v19 }
 0x211   :  { %v426_v29 = vadd.f32 %v425_v28, %v423_v24 }
 0x213   :  { %427 = vadd.xlane.f32.xlu1 %v426_v29 }
 0x224   :  { %447 = vperm.xlu1 %1802, %v2230_v59  }
 0x29c   :  { %v428_v33 = vpop.xlane.xlu1 %427 }
 0x29d   :  { %v429_v3 = vmul.f32 0.001953125, %v428_v33 }
 0x29f   :  { %v431_v35 = vadd.f32 1e-05, %v429_v3 }
 0x2a0   :  { %v448_v49 = vpop.permute.xlu1 %447 }
 0x2a1   :  { %1810 = vrsqrt.f32 %v431_v35 }
 0x2ae   :  { %v1811_v2 = vpop.eup %1810 }
 0x2af   :  { %v434_v39 = vmul.f32 %v1811_v2, %v417_v1  ;;  %v435_v44 = vmul.f32 %v1811_v2, %v418_v12  ;;  %v436_v45 = vmul.f32 %v1811_v2, %v419_v14  ;;  %v433_v50 = vmul.f32 %v1811_v2, %v416_v11 }
 0x2b1   :  { %v443_v51 = vmul.f32 %v440_v38, %v434_v39  ;;  %v444_v52 = vmul.f32 %v440_v38, %v435_v44  ;;  %v445_v53 = vmul.f32 %v440_v38, %v436_v45  ;;  %v442_v56 = vmul.f32 %v440_v38, %v433_v50 }
 0x2b3   :  { %v451_v54 = vadd.f32 %v448_v49, %v443_v51  ;;  %v452_v60 = vadd.f32 %v448_v49, %v444_v52  ;;  %v453_v61 = vadd.f32 %v448_v49, %v445_v53  ;;  %v450_v1 = vadd.f32 %v448_v49, %v442_v56 }
 0x2b5   :  { %v2234_v10 = vmax.f32 %v451_v54, 0.0  ;;  %v2240_v12 = vmax.f32 %v452_v60, 0.0  ;;  %v2242_v14 = vmax.f32 %v453_v61, 0.0  ;;  %v2248_v11 = vmax.f32 %v450_v1, 0.0 }
 0x2b7   :  { %584 = vrot.lane.b32.xlu0 %v2234_v10, %s1824_s23  ;;  %632 = vrot.lane.b32.xlu1 %v2234_v10, %s1822_s19 }
 0x2bb   :  { %636 = vrot.lane.b32.xlu0 %v2242_v14, %s1822_s19  ;;  %634 = vrot.lane.b32.xlu1 %v2240_v12, %s1822_s19 }
 0x2bf   :  { %560 = vrot.lane.b32.xlu0 %v2234_v10, %s1825_s26  ;;  %630 = vrot.lane.b32.xlu1 %v2248_v11, %s1822_s19 }
 0x2c3   :  { %612 = vrot.lane.b32.xlu0 %v2242_v14, %s1823_s22  ;;  %608 = vrot.lane.b32.xlu1 %v2234_v10, %s1823_s22 }
 0x2c7   :  { %588 = vrot.lane.b32.xlu0 %v2242_v14, %s1824_s23  ;;  %610 = vrot.lane.b32.xlu1 %v2240_v12, %s1823_s22 }
 0x2cb   :  { %532 = vrot.lane.b32.xlu0 %v2234_v10, %s1826_s0  ;;  %606 = vrot.lane.b32.xlu1 %v2248_v11, %s1823_s22 }
 0x2cf   :  { %536 = vrot.lane.b32.xlu0 %v2242_v14, %s1826_s0  ;;  %586 = vrot.lane.b32.xlu1 %v2240_v12, %s1824_s23 }
 0x2d3   :  { %508 = vrot.lane.b32.xlu0 %v2234_v10, %s1827_s27  ;;  %582 = vrot.lane.b32.xlu1 %v2248_v11, %s1824_s23 }
 0x2d7   :  { %482 = vrot.lane.b32.xlu0 %v2248_v11, %s1828_s28  ;;  %562 = vrot.lane.b32.xlu1 %v2240_v12, %s1825_s26 }
 0x2db   :  { %534 = vrot.lane.b32.xlu0 %v2240_v12, %s1826_s0  ;;  %558 = vrot.lane.b32.xlu1 %v2248_v11, %s1825_s26 }
 0x2df   :  { %458 = vrot.lane.b32.xlu0 %v2248_v11, %s1830_s29  ;;  %530 = vrot.lane.b32.xlu1 %v2248_v11, %s1826_s0 }
 0x2e3   :  { %510 = vrot.lane.b32.xlu0 %v2240_v12, %s1827_s27  ;;  %564 = vrot.lane.b32.xlu1 %v2242_v14, %s1825_s26 }
 0x2e7   :  { %486 = vrot.lane.b32.xlu0 %v2240_v12, %s1828_s28  ;;  %506 = vrot.lane.b32.xlu1 %v2248_v11, %s1827_s27 }
 0x2eb   :  { %512 = vrot.lane.b32.xlu1 %v2242_v14, %s1827_s27 }
 0x2ef   :  { %484 = vrot.lane.b32.xlu1 %v2234_v10, %s1828_s28 }
 0x2f3   :  { %488 = vrot.lane.b32.xlu1 %v2242_v14, %s1828_s28 }
 0x2f7   :  { %460 = vrot.lane.b32.xlu1 %v2234_v10, %s1830_s29 }
 0x2fb   :  { %464 = vrot.lane.b32.xlu1 %v2242_v14, %s1830_s29 }
 0x2ff   :  { %462 = vrot.lane.b32.xlu1 %v2240_v12, %s1830_s29 }
 0x329   :  { %v585_v15 = vpop.permute.xlu0 %584  ;;  %v633_v16 = vpop.permute.xlu1 %632 }
 0x32d   :  { %v637_v19 = vpop.permute.xlu0 %636  ;;  %v635_v21 = vpop.permute.xlu1 %634 }
 0x32e   :  { %v639_v24 = vsel %vm210_vm0, %v633_v16, %v635_v21  ;;  %v638_v29 = vsel %vm210_vm0, %v635_v21, %v637_v19 }
 0x32f   :  { %v647_v28 = vmul.f32 %v639_v24, %v1956_v9  ;;  %v648_v44 = vmul.f32 %v638_v29, %v2008_v32 }
 0x331   :  { %v561_v33 = vpop.permute.xlu0 %560  ;;  %709 = vmatprep.subr.mxu0 %v647_v28  ;;  %v631_v3 = vpop.permute.xlu1 %630 }
 0x332   :  { %v640_v35 = vsel %vm210_vm0, %v631_v3, %v633_v16  ;;  %v641_v2 = vsel %vm210_vm0, %v637_v19, %v631_v3 }
 0x333   :  { %v646_v38 = vmul.f32 %v640_v35, %v1963_v13  ;;  %v649_v39 = vmul.f32 %v641_v2, %v2003_v31 }
 0x335   :  { %v613_v45 = vpop.permute.xlu0 %612  ;;  %710 = vmatpush1.msra.mxu0 %v646_v38  ;;  %780 = vmatprep.subr.mxu1 %v649_v39  ;;  %v609_v49 = vpop.permute.xlu1 %608 }
 0x336   :  { %781 = vmatpush1.msra.mxu1 %v648_v44 }
 0x339   :  { %v589_v50 = vpop.permute.xlu0 %588  ;;  %v611_v51 = vpop.permute.xlu1 %610 }
 0x33a   :  { %v615_v52 = vsel %vm185_vm1, %v609_v49, %v611_v51  ;;  %v614_v54 = vsel %vm185_vm1, %v611_v51, %v613_v45 }
 0x33b   :  { %v623_v53 = vmul.f32 %v615_v52, %v1973_v17  ;;  %v624_v19 = vmul.f32 %v614_v54, %v2041_v48 }
 0x33d   :  { %v533_v56 = vpop.permute.xlu0 %532  ;;  %711 = vmatprep.subr.mxu0 %v623_v53  ;;  %v607_v31 = vpop.permute.xlu1 %606 }
 0x33e   :  { %v616_v60 = vsel %vm185_vm1, %v607_v31, %v609_v49  ;;  %v617_v61 = vsel %vm185_vm1, %v613_v45, %v607_v31 }
 0x33f   :  { %v622_v1 = vmul.f32 %v616_v60, %v1978_v18  ;;  %v625_v16 = vmul.f32 %v617_v61, %v2036_v47 }
 0x341   :  { %v537_v21 = vpop.permute.xlu0 %536  ;;  %712 = vmatpush1.msra.mxu0 %v622_v1  ;;  %782 = vmatprep.subr.mxu1 %v625_v16  ;;  %v587_v17 = vpop.permute.xlu1 %586 }
 0x342   :  { %v591_v24 = vsel %vm160_vm2, %v585_v15, %v587_v17  ;;  %783 = vmatpush1.msra.mxu1 %v624_v19  ;;  %v590_v29 = vsel %vm160_vm2, %v587_v17, %v589_v50 }
 0x343   :  { %v599_v28 = vmul.f32 %v591_v24, %v1990_v25  ;;  %v600_v39 = vmul.f32 %v590_v29, %v2060_v58 }
 0x345   :  { %v509_v3 = vpop.permute.xlu0 %508  ;;  %713 = vmatprep.subr.mxu0 %v599_v28  ;;  %v583_v35 = vpop.permute.xlu1 %582 }
 0x346   :  { %v592_v47 = vsel %vm160_vm2, %v583_v35, %v585_v15  ;;  %v593_v48 = vsel %vm160_vm2, %v589_v50, %v583_v35 }
 0x347   :  { %v598_v2 = vmul.f32 %v592_v47, %v1998_v30  ;;  %v601_v38 = vmul.f32 %v593_v48, %v2055_v57 }
 0x349   :  { %v483_v44 = vpop.permute.xlu0 %482  ;;  %714 = vmatpush1.msra.mxu0 %v598_v2  ;;  %784 = vmatprep.subr.mxu1 %v601_v38  ;;  %v563_v25 = vpop.permute.xlu1 %562 }
 0x34a   :  { %v567_v45 = vsel %vm135_vm3, %v561_v33, %v563_v25  ;;  %785 = vmatpush1.msra.mxu1 %v600_v39 }
 0x34b   :  { %v575_v49 = vmul.f32 %v567_v45, %v2023_v41 }
 0x34d   :  { %715 = vmatprep.subr.mxu0 %v575_v49  ;;  %v559_v15 = vpop.permute.xlu1 %558  ;;  %v535_v51 = vpop.permute.xlu0 %534 }
 0x34e   :  { %v568_v50 = vsel %vm135_vm3, %v559_v15, %v561_v33 }
 0x34f   :  { %v574_v57 = vmul.f32 %v568_v50, %v2031_v46 }
 0x351   :  { %716 = vmatpush1.msra.mxu0 %v574_v57  ;;  %v531_v58 = vpop.permute.xlu1 %530  ;;  %v459_v31 = vpop.permute.xlu0 %458 }
 0x352   :  { %v540_v52 = vsel %vm106_vm4, %v531_v58, %v533_v56  ;;  %v541_v53 = vsel %vm106_vm4, %v537_v21, %v531_v58  ;;  %717 = vmatprep.subr.mxu0 %v2234_v10 }
 0x353   :  { %v546_v41 = vmul.f32 %v541_v53, %v2098_v20  ;;  %718 = vmatpush1.msra.mxu0 %v2248_v11  ;;  %v547_v54 = vmul.f32 %v540_v52, %v2074_v7  ;;  %v538_v20 = vsel %vm106_vm4, %v535_v51, %v537_v21  ;;  %v539_v7 = vsel %vm106_vm4, %v533_v56, %v535_v51  ;;  %v1775_v52 = vld [vmem:[%s2911_s1 + $0x8] sm:$0xff] }
 0x354   :  { %v549_v17 = vmul.f32 %v538_v20, %v2139_v42  ;;  %v548_v28 = vmul.f32 %v539_v7, %v2144_v43 }
 0x355   :  { %719 = vmatprep.subr.mxu0 %v547_v54  ;;  %v565_v33 = vpop.permute.xlu1 %564  ;;  %v511_v16 = vpop.permute.xlu0 %510 }
 0x356   :  { %v566_v60 = vsel %vm135_vm3, %v563_v25, %v565_v33  ;;  %v569_v61 = vsel %vm135_vm3, %v565_v33, %v559_v15  ;;  %720 = vmatpush1.msra.mxu0 %v546_v41  ;;  %v515_v56 = vsel %vm81_vm5, %v509_v3, %v511_v16 }
 0x357   :  { %v576_v1 = vmul.f32 %v566_v60, %v2084_v0  ;;  %v577_v10 = vmul.f32 %v569_v61, %v2079_v8  ;;  %v524_v35 = vmul.f32 %v515_v56, %v2177_v5 }
 0x359   :  { %786 = vmatprep.subr.mxu1 %v577_v10  ;;  %v507_v11 = vpop.permute.xlu1 %506  ;;  %v487_v48 = vpop.permute.xlu0 %486 }
 0x35a   :  { %v516_v19 = vsel %vm81_vm5, %v507_v11, %v509_v3  ;;  %787 = vmatpush1.msra.mxu1 %v576_v1 }
 0x35b   :  { %788 = vmatprep.subr.mxu1 %v2242_v14  ;;  %v523_v24 = vmul.f32 %v516_v19, %v2108_v26  ;;  %v1834_v19 = vmov 3  }
 0x35c   :  { %789 = vmatpush1.msra.mxu1 %v2240_v12  ;;  %1804 = vset.pattern.permute.xlu1 %v1834_v19 }
 0x35d   :  { %721 = vmatprep.subr.mxu0 %v523_v24  ;;  %790 = vmatprep.subr.mxu1 %v549_v17  ;;  %v513_v21 = vpop.permute.xlu1 %512 }
 0x35e   :  { %v514_v29 = vsel %vm81_vm5, %v511_v16, %v513_v21  ;;  %v517_v42 = vsel %vm81_vm5, %v513_v21, %v507_v11  ;;  %791 = vmatpush1.msra.mxu1 %v548_v28  ;;  %v1833_v16 = vmov 2  }
 0x35f   :  { %v522_v14 = vmul.f32 %v517_v42, %v2113_v27  ;;  %v525_v26 = vmul.f32 %v514_v29, %v2172_v63  ;;  %1803 = vset.pattern.permute.xlu0 %v1833_v16 }
 0x361   :  { %722 = vmatpush1.msra.mxu0 %v522_v14  ;;  %792 = vmatprep.subr.mxu1 %v525_v26  ;;  %v485_v12 = vpop.permute.xlu1 %484 }
 0x362   :  { %v492_v3 = vsel %vm56_vm6, %v483_v44, %v485_v12  ;;  %793 = vmatpush1.msra.mxu1 %v524_v35  ;;  %v491_v2 = vsel %vm56_vm6, %v485_v12, %v487_v48 }
 0x363   :  { %v499_v47 = vmul.f32 %v492_v3, %v2126_v36  ;;  %v500_v15 = vmul.f32 %v491_v2, %v2199_v23 }
 0x365   :  { %723 = vmatprep.subr.mxu0 %v499_v47  ;;  %v489_v38 = vpop.permute.xlu1 %488 }
 0x366   :  { %v490_v39 = vsel %vm56_vm6, %v487_v48, %v489_v38  ;;  %v493_v25 = vsel %vm56_vm6, %v489_v38, %v483_v44 }
 0x367   :  { %v498_v45 = vmul.f32 %v493_v25, %v2134_v40  ;;  %v501_v49 = vmul.f32 %v490_v39, %v2194_v22 }
 0x369   :  { %724 = vmatpush1.msra.mxu0 %v498_v45  ;;  %794 = vmatprep.subr.mxu1 %v501_v49  ;;  %v461_v36 = vpop.permute.xlu1 %460 }
 0x36a   :  { %v468_v51 = vsel %vm31_vm7, %v459_v31, %v461_v36  ;;  %795 = vmatpush1.msra.mxu1 %v500_v15 }
 0x36b   :  { %v475_v50 = vmul.f32 %v468_v51, %v2159_v55 }
 0x36d   :  { %725 = vmatprep.subr.mxu0 %v475_v50  ;;  %v465_v57 = vpop.permute.xlu1 %464 }
 0x36e   :  { %v469_v44 = vsel %vm31_vm7, %v465_v57, %v459_v31 }
 0x36f   :  { %v474_v58 = vmul.f32 %v469_v44, %v2167_v62 }
 0x371   :  { %726 = vmatpush1.msra.mxu0 %v474_v58  ;;  %v463_v53 = vpop.permute.xlu1 %462 }
 0x372   :  { %v466_v41 = vsel %vm31_vm7, %v463_v53, %v465_v57  ;;  %v467_v54 = vsel %vm31_vm7, %v461_v36, %v463_v53  ;;  %1776 = vmatmul.mubr.msk.f32.vlgmr.msra.gmra.mxu0 %vm264_vm8, %v1775_v52 }
 0x373   :  { %v476_v33 = vmul.f32 %v467_v54, %v2220_v37  ;;  %v477_v31 = vmul.f32 %v466_v41, %v2210_v34  ;;  %1186 = vmatprep.mubr.f32.mxu0 %v1829_v4 }
 0x375   :  { %796 = vmatprep.subr.mxu1 %v477_v31 }
 0x376   :  { %797 = vmatpush1.msra.mxu1 %v476_v33 }
 0x377   :  { %1777 = vmatmul.mubr.msk.f32.vlgmr.msra.gmra.mxu1 %vm264_vm8, %v1775_v52 }
 0x378   :  { %1257 = vmatprep.mubr.f32.mxu1 %v1829_v4 }
 0x432   :  { %v761_v60 = vpop.f32.mrf.mxu0 }
 0x434   :  { %v763_v61 = vpop.f32.mrf.mxu0 }
 0x435   :  { %v837_v1 = vadd.f32 %v763_v61, %v761_v60 }
 0x437   :  { %v832_v10 = vpop.f32.mrf.mxu1 }
 0x438   :  { %v838_v20 = vadd.f32 %v837_v1, %v832_v10 }
 0x439   :  { %v834_v7 = vpop.f32.mrf.mxu1 }
 0x43a   :  { %v839_v11 = vadd.f32 %v838_v20, %v834_v7 }
 0x43c   :  { %840 = vadd.xlane.f32.xlu0 %v839_v11 }
 0x452   :  { %866 = vperm.xlu0 %1803, %v2230_v59  }
 0x4c5   :  { %v841_v17 = vpop.xlane.xlu0 %840 }
 0x4c6   :  { %v842_v24 = vmul.f32 0.001953125, %v841_v17 }
 0x4c8   :  { %v843_v28 = vsub.f32 %v761_v60, %v842_v24  ;;  %v844_v56 = vsub.f32 %v763_v61, %v842_v24  ;;  %v845_v21 = vsub.f32 %v832_v10, %v842_v24  ;;  %v846_v29 = vsub.f32 %v834_v7, %v842_v24 }
 0x4ca   :  { %v847_v42 = vmul.f32 %v843_v28, %v843_v28  ;;  %v848_v14 = vmul.f32 %v844_v56, %v844_v56  ;;  %v849_v26 = vmul.f32 %v845_v21, %v845_v21  ;;  %v850_v12 = vmul.f32 %v846_v29, %v846_v29 }
 0x4cc   :  { %v851_v35 = vadd.f32 %v848_v14, %v847_v42 }
 0x4cd   :  { %v867_v25 = vpop.permute.xlu0 %866 }
 0x4ce   :  { %v852_v3 = vadd.f32 %v851_v35, %v849_v26 }
 0x4d0   :  { %v853_v47 = vadd.f32 %v852_v3, %v850_v12  ;;  %v2509_v12 = vld [vmem:[%s2910_s3 + $0xc8] sm:$0xff] }
 0x4d2   :  { %854 = vadd.xlane.f32.xlu1 %v853_v47 }
 0x4e3   :  { %874 = vperm.xlu1 %1804, %v2230_v59  }
 0x55b   :  { %v855_v48 = vpop.xlane.xlu1 %854 }
 0x55c   :  { %v856_v2 = vmul.f32 0.001953125, %v855_v48 }
 0x55e   :  { %v858_v38 = vadd.f32 1e-05, %v856_v2 }
 0x55f   :  { %v875_v36 = vpop.permute.xlu1 %874 }
 0x560   :  { %1812 = vrsqrt.f32 %v858_v38 }
 0x56d   :  { %v1813_v39 = vpop.eup %1812 }
 0x56e   :  { %v860_v45 = vmul.f32 %v1813_v39, %v843_v28  ;;  %v861_v49 = vmul.f32 %v1813_v39, %v844_v56  ;;  %v862_v15 = vmul.f32 %v1813_v39, %v845_v21  ;;  %v863_v33 = vmul.f32 %v1813_v39, %v846_v29  ;;  %v2498_v29 = vld [vmem:[%s2910_s3 + $0xe8] sm:$0xff]  ;;  %v2523_v39 = vld [vmem:[%s2910_s3 + $0x118] sm:$0xff] }
 0x570   :  { %v869_v51 = vmul.f32 %v867_v25, %v860_v45  ;;  %v870_v50 = vmul.f32 %v867_v25, %v861_v49  ;;  %v871_v57 = vmul.f32 %v867_v25, %v862_v15  ;;  %v872_v31 = vmul.f32 %v867_v25, %v863_v33  ;;  %v2545_v33 = vld [vmem:[%s2910_s3 + $0xf0] sm:$0xff] }
 0x572   :  { %v877_v44 = vadd.f32 %v875_v36, %v869_v51  ;;  %v878_v58 = vadd.f32 %v875_v36, %v870_v50  ;;  %v879_v52 = vadd.f32 %v875_v36, %v871_v57  ;;  %v880_v60 = vadd.f32 %v875_v36, %v872_v31  ;;  %v2534_v51 = vld [vmem:[%s2910_s3 + $0xa8] sm:$0xff]  ;;  %v2550_v31 = vld [vmem:[%s2910_s3 + $0xf8] sm:$0xff] }
 0x574   :  { %v2415_v53 = vmax.f32 %v877_v44, 0.0  ;;  %v2417_v41 = vmax.f32 %v878_v58, 0.0  ;;  %v2423_v54 = vmax.f32 %v879_v52, 0.0  ;;  %v2445_v61 = vmax.f32 %v880_v60, 0.0 }
 0x576   :  { %1059 = vrot.lane.b32.xlu1 %v2417_v41, %s1822_s19  ;;  %1033 = vrot.lane.b32.xlu0 %v2415_v53, %s1823_s22 }
 0x57a   :  { %1061 = vrot.lane.b32.xlu1 %v2423_v54, %s1822_s19  ;;  %1013 = vrot.lane.b32.xlu0 %v2423_v54, %s1824_s23 }
 0x57e   :  { %1009 = vrot.lane.b32.xlu0 %v2415_v53, %s1824_s23  ;;  %1057 = vrot.lane.b32.xlu1 %v2415_v53, %s1822_s19 }
 0x582   :  { %989 = vrot.lane.b32.xlu0 %v2423_v54, %s1825_s26  ;;  %1035 = vrot.lane.b32.xlu1 %v2417_v41, %s1823_s22 }
 0x586   :  { %985 = vrot.lane.b32.xlu0 %v2415_v53, %s1825_s26  ;;  %1037 = vrot.lane.b32.xlu1 %v2423_v54, %s1823_s22 }
 0x58a   :  { %957 = vrot.lane.b32.xlu0 %v2415_v53, %s1826_s0  ;;  %1011 = vrot.lane.b32.xlu1 %v2417_v41, %s1824_s23 }
 0x58e   :  { %991 = vrot.lane.b32.xlu0 %v2445_v61, %s1825_s26  ;;  %1063 = vrot.lane.b32.xlu1 %v2445_v61, %s1822_s19 }
 0x592   :  { %933 = vrot.lane.b32.xlu0 %v2415_v53, %s1827_s27  ;;  %987 = vrot.lane.b32.xlu1 %v2417_v41, %s1825_s26 }
 0x596   :  { %939 = vrot.lane.b32.xlu0 %v2445_v61, %s1827_s27  ;;  %1039 = vrot.lane.b32.xlu1 %v2445_v61, %s1823_s22 }
 0x59a   :  { %911 = vrot.lane.b32.xlu0 %v2417_v41, %s1828_s28  ;;  %1015 = vrot.lane.b32.xlu1 %v2445_v61, %s1824_s23 }
 0x59e   :  { %915 = vrot.lane.b32.xlu0 %v2445_v61, %s1828_s28  ;;  %959 = vrot.lane.b32.xlu1 %v2417_v41, %s1826_s0 }
 0x5a2   :  { %887 = vrot.lane.b32.xlu0 %v2417_v41, %s1830_s29  ;;  %963 = vrot.lane.b32.xlu1 %v2445_v61, %s1826_s0 }
 0x5a6   :  { %891 = vrot.lane.b32.xlu0 %v2445_v61, %s1830_s29  ;;  %935 = vrot.lane.b32.xlu1 %v2417_v41, %s1827_s27 }
 0x5aa   :  { %889 = vrot.lane.b32.xlu0 %v2423_v54, %s1830_s29  ;;  %909 = vrot.lane.b32.xlu1 %v2415_v53, %s1828_s28 }
 0x5ae   :  { %961 = vrot.lane.b32.xlu1 %v2423_v54, %s1826_s0 }
 0x5b2   :  { %885 = vrot.lane.b32.xlu1 %v2415_v53, %s1830_s29 }
 0x5b6   :  { %937 = vrot.lane.b32.xlu1 %v2423_v54, %s1827_s27 }
 0x5ba   :  { %913 = vrot.lane.b32.xlu1 %v2423_v54, %s1828_s28 }
 0x5e8   :  { %v1060_v1 = vpop.permute.xlu1 %1059  ;;  %v1034_v10 = vpop.permute.xlu0 %1033 }
 0x5ec   :  { %v1062_v20 = vpop.permute.xlu1 %1061  ;;  %v2487_v7 = vpop.permute.xlu0 %1013 }
 0x5ed   :  { %v1066_v11 = vsel %vm210_vm0, %v1060_v1, %v1062_v20 }
 0x5ee   :  { %v1074_v16 = vmul.f32 %v1066_v11, %v1956_v9 }
 0x5f0   :  { %1136 = vmatprep.subr.mxu0 %v1074_v16  ;;  %v1010_v19 = vpop.permute.xlu0 %1009  ;;  %v1058_v17 = vpop.permute.xlu1 %1057  ;;  %v2563_v16 = vld [vmem:[%s2910_s3 + $0xd0] sm:$0xff] }
 0x5f1   :  { %v1067_v24 = vsel %vm210_vm0, %v1058_v17, %v1060_v1 }
 0x5f2   :  { %v1073_v28 = vmul.f32 %v1067_v24, %v1963_v13 }
 0x5f4   :  { %v990_v56 = vpop.permute.xlu0 %989  ;;  %1137 = vmatpush1.msra.mxu0 %v1073_v28  ;;  %v1036_v21 = vpop.permute.xlu1 %1035 }
 0x5f5   :  { %v1043_v42 = vsel %vm185_vm1, %v1034_v10, %v1036_v21 }
 0x5f6   :  { %v1049_v13 = vmul.f32 %v1043_v42, %v1978_v18 }
 0x5f8   :  { %v986_v9 = vpop.permute.xlu0 %985  ;;  %v1038_v14 = vpop.permute.xlu1 %1037 }
 0x5f9   :  { %v1042_v26 = vsel %vm185_vm1, %v1036_v21, %v1038_v14 }
 0x5fa   :  { %v1050_v35 = vmul.f32 %v2498_v29, %v1042_v26  ;;  %v2586_v26 = vld [vmem:[%s2910_s3 + $0x68] sm:$0xff] }
 0x5fc   :  { %v2511_v3 = vpop.permute.xlu0 %957  ;;  %1138 = vmatprep.subr.mxu0 %v1050_v35  ;;  %v1012_v47 = vpop.permute.xlu1 %1011 }
 0x5fd   :  { %v1018_v48 = vsel %vm160_vm2, %v1012_v47, %v2487_v7  ;;  %v1019_v2 = vsel %vm160_vm2, %v1010_v19, %v1012_v47  ;;  %1139 = vmatpush1.msra.mxu0 %v1049_v13  ;;  %v2597_v47 = vld [vmem:[%s2910_s3 + $0x60] sm:$0xff] }
 0x5fe   :  { %v1025_v38 = vmul.f32 %v1019_v2, %v1998_v30  ;;  %v1026_v18 = vmul.f32 %v2509_v12, %v1018_v48  ;;  %v2608_v2 = vld [vmem:[%s2910_s3 + $0x48] sm:$0xff] }
 0x600   :  { %v992_v25 = vpop.permute.xlu0 %991  ;;  %1140 = vmatprep.subr.mxu0 %v1026_v18  ;;  %v1064_v45 = vpop.permute.xlu1 %1063 }
 0x601   :  { %v1065_v49 = vsel %vm210_vm0, %v1062_v20, %v1064_v45  ;;  %v1068_v15 = vsel %vm210_vm0, %v1064_v45, %v1058_v17  ;;  %1141 = vmatpush1.msra.mxu0 %v1025_v38  ;;  %v2568_v17 = vld [vmem:[%s2910_s3 + $0xd8] sm:$0xff]  ;;  %v996_v28 = vsel %vm135_vm3, %v992_v25, %v986_v9  ;;  %v993_v21 = vsel %vm135_vm3, %v990_v56, %v992_v25  ;;  %v2620_v45 = vld [vmem:[%s2910_s3 + $0x28] sm:$0xff] }
 0x602   :  { %v1075_v36 = vmul.f32 %v1065_v49, %v2008_v32  ;;  %v1076_v30 = vmul.f32 %v2523_v39, %v1068_v15  ;;  %v1003_v35 = vmul.f32 %v993_v21, %v2084_v0 }
 0x604   :  { %1207 = vmatprep.subr.mxu1 %v1076_v30  ;;  %v988_v50 = vpop.permute.xlu1 %987  ;;  %v934_v58 = vpop.permute.xlu0 %933 }
 0x605   :  { %v994_v57 = vsel %vm135_vm3, %v988_v50, %v990_v56  ;;  %v995_v44 = vsel %vm135_vm3, %v986_v9, %v988_v50  ;;  %1208 = vmatpush1.msra.mxu1 %v1075_v36  ;;  %v1004_v9 = vmul.f32 %v996_v28, %v2079_v8 }
 0x606   :  { %v1001_v52 = vmul.f32 %v995_v44, %v2031_v46  ;;  %v1002_v32 = vmul.f32 %v2534_v51, %v994_v57 }
 0x608   :  { %1142 = vmatprep.subr.mxu0 %v1002_v32  ;;  %v1040_v60 = vpop.permute.xlu1 %1039 }
 0x609   :  { %v1041_v1 = vsel %vm185_vm1, %v1038_v14, %v1040_v60  ;;  %v1044_v46 = vsel %vm185_vm1, %v1040_v60, %v1034_v10  ;;  %1143 = vmatpush1.msra.mxu0 %v1001_v52  ;;  %v2570_v10 = vpop.permute.xlu0 %939 }
 0x60a   :  { %v1051_v20 = vmul.f32 %v2545_v33, %v1041_v1  ;;  %v1052_v11 = vmul.f32 %v2550_v31, %v1044_v46  ;;  %1144 = vmatprep.subr.mxu0 %v2417_v41  ;;  %v944_v38 = vsel %vm81_vm5, %v2570_v10, %v934_v58 }
 0x60b   :  { %1145 = vmatpush1.msra.mxu0 %v2415_v53 }
 0x60c   :  { %1209 = vmatprep.subr.mxu1 %v1052_v11  ;;  %v1016_v24 = vpop.permute.xlu1 %1015 }
 0x60d   :  { %v1017_v53 = vsel %vm160_vm2, %v2487_v7, %v1016_v24  ;;  %v1020_v41 = vsel %vm160_vm2, %v1016_v24, %v1010_v19  ;;  %1210 = vmatpush1.msra.mxu1 %v1051_v20  ;;  %v912_v56 = vpop.permute.xlu0 %911 }
 0x60e   :  { %v1027_v42 = vmul.f32 %v2563_v16, %v1017_v53  ;;  %v1028_v14 = vmul.f32 %v2568_v17, %v1020_v41 }
 0x610   :  { %1211 = vmatprep.subr.mxu1 %v1028_v14  ;;  %v960_v7 = vpop.permute.xlu1 %959 }
 0x611   :  { %v967_v19 = vsel %vm106_vm4, %v2511_v3, %v960_v7  ;;  %1212 = vmatpush1.msra.mxu1 %v1027_v42  ;;  %v916_v18 = vpop.permute.xlu0 %915 }
 0x612   :  { %v974_v13 = vmul.f32 %v2586_v26, %v967_v19  ;;  %1213 = vmatprep.subr.mxu1 %v1004_v9 }
 0x613   :  { %1214 = vmatpush1.msra.mxu1 %v1003_v35 }
 0x614   :  { %1146 = vmatprep.subr.mxu0 %v974_v13  ;;  %1215 = vmatprep.subr.mxu1 %v2445_v61  ;;  %v964_v8 = vpop.permute.xlu1 %963 }
 0x615   :  { %v968_v0 = vsel %vm106_vm4, %v964_v8, %v2511_v3  ;;  %1216 = vmatpush1.msra.mxu1 %v2423_v54  ;;  %v949_v54 = vmul.f32 %v944_v38, %v2113_v27  ;;  %v888_v30 = vpop.permute.xlu0 %887  ;;  %v2631_v27 = vld [vmem:[%s2910_s3 + $0x78] sm:$0xff] }
 0x616   :  { %v973_v48 = vmul.f32 %v2597_v47, %v968_v0 }
 0x618   :  { %1147 = vmatpush1.msra.mxu0 %v973_v48  ;;  %v936_v61 = vpop.permute.xlu1 %935 }
 0x619   :  { %v943_v25 = vsel %vm81_vm5, %v934_v58, %v936_v61  ;;  %v892_v60 = vpop.permute.xlu0 %891 }
 0x61a   :  { %v950_v3 = vmul.f32 %v2608_v2, %v943_v25 }
 0x61c   :  { %1148 = vmatprep.subr.mxu0 %v950_v3  ;;  %v910_v49 = vpop.permute.xlu1 %909 }
 0x61d   :  { %v919_v15 = vsel %vm56_vm6, %v910_v49, %v912_v56  ;;  %v920_v36 = vsel %vm56_vm6, %v916_v18, %v910_v49  ;;  %1149 = vmatpush1.msra.mxu0 %v949_v54  ;;  %v890_v21 = vpop.permute.xlu0 %889 }
 0x61e   :  { %v925_v50 = vmul.f32 %v920_v36, %v2134_v40  ;;  %v926_v57 = vmul.f32 %v2620_v45, %v919_v15  ;;  %v893_v14 = vsel %vm31_vm7, %v890_v21, %v892_v60 }
 0x61f   :  { %v904_v35 = vmul.f32 %v893_v14, %v2210_v34  ;;  %v1836_v34 = vmov 5  }
 0x620   :  { %1150 = vmatprep.subr.mxu0 %v926_v57  ;;  %v962_v44 = vpop.permute.xlu1 %961  ;;  %1806 = vset.pattern.permute.xlu1 %v1836_v34 }
 0x621   :  { %v965_v58 = vsel %vm106_vm4, %v962_v44, %v964_v8  ;;  %v966_v52 = vsel %vm106_vm4, %v960_v7, %v962_v44  ;;  %1151 = vmatpush1.msra.mxu0 %v925_v50 }
 0x622   :  { %v975_v32 = vmul.f32 %v966_v52, %v2144_v43  ;;  %v976_v40 = vmul.f32 %v2631_v27, %v965_v58  ;;  %v1778_v43 = vld [vmem:[%s2911_s1 + $0x10] sm:$0xff] }
 0x624   :  { %1217 = vmatprep.subr.mxu1 %v976_v40  ;;  %v886_v1 = vpop.permute.xlu1 %885 }
 0x625   :  { %v895_v46 = vsel %vm31_vm7, %v886_v1, %v888_v30  ;;  %v896_v20 = vsel %vm31_vm7, %v892_v60, %v886_v1  ;;  %1218 = vmatpush1.msra.mxu1 %v975_v32 }
 0x626   :  { %v901_v11 = vmul.f32 %v896_v20, %v2167_v62  ;;  %v902_v24 = vmul.f32 %v895_v46, %v2159_v55 }
 0x628   :  { %1152 = vmatprep.subr.mxu0 %v902_v24  ;;  %v938_v28 = vpop.permute.xlu1 %937 }
 0x629   :  { %v941_v53 = vsel %vm81_vm5, %v938_v28, %v2570_v10  ;;  %v942_v41 = vsel %vm81_vm5, %v936_v61, %v938_v28  ;;  %1153 = vmatpush1.msra.mxu0 %v901_v11 }
 0x62a   :  { %v951_v42 = vmul.f32 %v942_v41, %v2177_v5  ;;  %v952_v62 = vmul.f32 %v941_v53, %v2172_v63  ;;  %1779 = vmatmul.mubr.msk.f32.vlgmr.msra.gmra.mxu0 %vm264_vm8, %v1778_v43  ;;  %v894_v5 = vsel %vm31_vm7, %v888_v30, %v890_v21 }
 0x62b   :  { %1613 = vmatprep.mubr.f32.mxu0 %v1829_v4  ;;  %v903_v19 = vmul.f32 %v894_v5, %v2220_v37 }
 0x62c   :  { %1219 = vmatprep.subr.mxu1 %v952_v62  ;;  %v914_v55 = vpop.permute.xlu1 %913 }
 0x62d   :  { %v917_v10 = vsel %vm56_vm6, %v914_v55, %v916_v18  ;;  %v918_v9 = vsel %vm56_vm6, %v912_v56, %v914_v55  ;;  %1220 = vmatpush1.msra.mxu1 %v951_v42 }
 0x62e   :  { %v927_v63 = vmul.f32 %v918_v9, %v2199_v23  ;;  %v928_v7 = vmul.f32 %v917_v10, %v2194_v22  ;;  %v1835_v22 = vmov 4  }
 0x62f   :  { %1805 = vset.pattern.permute.xlu0 %v1835_v22 }
 0x630   :  { %1221 = vmatprep.subr.mxu1 %v928_v7 }
 0x631   :  { %1222 = vmatpush1.msra.mxu1 %v927_v63  ;;  %v1497_v63 = vld [vmem:[%s2910_s3 + $0x108] sm:$0xff] }
 0x632   :  { %1223 = vmatprep.subr.mxu1 %v904_v35 }
 0x633   :  { %1224 = vmatpush1.msra.mxu1 %v903_v19 }
 0x634   :  { %1780 = vmatmul.mubr.msk.f32.vlgmr.msra.gmra.mxu1 %vm264_vm8, %v1778_v43 }
 0x635   :  { %1684 = vmatprep.mubr.f32.mxu1 %v1829_v4 }
 0x6ea   :  { %v1188_v56 = vpop.f32.mrf.mxu0 }
 0x6ec   :  { %v1190_v13 = vpop.f32.mrf.mxu0 }
 0x6ed   :  { %v1264_v8 = vadd.f32 %v1190_v13, %v1188_v56 }
 0x6f4   :  { %v1259_v0 = vpop.f32.mrf.mxu1 }
 0x6f5   :  { %v1265_v48 = vadd.f32 %v1264_v8, %v1259_v0 }
 0x6f6   :  { %v1261_v23 = vpop.f32.mrf.mxu1 }
 0x6f7   :  { %v1266_v38 = vadd.f32 %v1265_v48, %v1261_v23 }
 0x6f9   :  { %1267 = vadd.xlane.f32.xlu1 %v1266_v38 }
 0x70a   :  { %1301 = vperm.xlu1 %1806, %v2230_v59  }
 0x782   :  { %v1268_v37 = vpop.xlane.xlu1 %1267 }
 0x783   :  { %v1269_v18 = vmul.f32 0.001953125, %v1268_v37 }
 0x785   :  { %v1270_v61 = vsub.f32 %v1188_v56, %v1269_v18  ;;  %v1271_v25 = vsub.f32 %v1190_v13, %v1269_v18  ;;  %v1272_v3 = vsub.f32 %v1259_v0, %v1269_v18  ;;  %v1273_v4 = vsub.f32 %v1261_v23, %v1269_v18  ;;  %v1496_v13 = vld [vmem:[%s2910_s3 + $0x100] sm:$0xff] }
 0x786   :  { %v1302_v20 = vpop.permute.xlu1 %1301 }
 0x787   :  { %v1274_v54 = vmul.f32 %v1270_v61, %v1270_v61  ;;  %v1275_v49 = vmul.f32 %v1271_v25, %v1271_v25  ;;  %v1276_v15 = vmul.f32 %v1272_v3, %v1272_v3  ;;  %v1277_v30 = vmul.f32 %v1273_v4, %v1273_v4 }
 0x789   :  { %v1278_v36 = vadd.f32 %v1275_v49, %v1274_v54  ;;  %v1448_v49 = vld [vmem:[%s2910_s3 + $0xc0] sm:$0xff] }
 0x78b   :  { %v1279_v50 = vadd.f32 %v1278_v36, %v1276_v15 }
 0x78d   :  { %v1280_v57 = vadd.f32 %v1279_v50, %v1277_v30 }
 0x78f   :  { %1281 = vadd.xlane.f32.xlu0 %v1280_v57  ;;  %v1498_v57 = vld [vmem:[%s2910_s3 + $0x110] sm:$0xff] }
 0x7a5   :  { %1293 = vperm.xlu0 %1805, %v2230_v59  }
 0x7a9   :  { %1807 = vset.pattern.permute.xlu0 %v1837_v6 }
 0x818   :  { %v1282_v44 = vpop.xlane.xlu0 %1281 }
 0x819   :  { %v1283_v58 = vmul.f32 0.001953125, %v1282_v44 }
 0x81b   :  { %v1285_v52 = vadd.f32 1e-05, %v1283_v58 }
 0x81d   :  { %1814 = vrsqrt.f32 %v1285_v52 }
 0x820   :  { %v1294_v40 = vpop.permute.xlu0 %1293 }
 0x82a   :  { %v1815_v32 = vpop.eup %1814 }
 0x82b   :  { %v1287_v60 = vmul.f32 %v1815_v32, %v1270_v61  ;;  %v1288_v1 = vmul.f32 %v1815_v32, %v1271_v25  ;;  %v1289_v46 = vmul.f32 %v1815_v32, %v1272_v3  ;;  %v1290_v62 = vmul.f32 %v1815_v32, %v1273_v4  ;;  %v1472_v61 = vld [vmem:[%s2910_s3 + $0xe0] sm:$0xff] }
 0x82d   :  { %v1296_v11 = vmul.f32 %v1294_v40, %v1287_v60  ;;  %v1297_v24 = vmul.f32 %v1294_v40, %v1288_v1  ;;  %v1298_v43 = vmul.f32 %v1294_v40, %v1289_v46  ;;  %v1299_v55 = vmul.f32 %v1294_v40, %v1290_v62 }
 0x82f   :  { %v1305_v28 = vadd.f32 %v1302_v20, %v1297_v24  ;;  %v1306_v53 = vadd.f32 %v1302_v20, %v1298_v43  ;;  %v1304_v41 = vadd.f32 %v1302_v20, %v1296_v11  ;;  %v1307_v14 = vadd.f32 %v1302_v20, %v1299_v55 }
 0x831   :  { %v2673_v21 = vmax.f32 %v1305_v28, 0.0  ;;  %v2675_v42 = vmax.f32 %v1306_v53, 0.0  ;;  %v2681_v59 = vmax.f32 %v1304_v41, 0.0  ;;  %v2699_v10 = vmax.f32 %v1307_v14, 0.0  ;;  %v1427_v14 = vld [vmem:[%s2910_s3 + $0xb8] sm:$0xff] }
 0x833   :  { %1440 = vrot.lane.b32.xlu0 %v2675_v42, %s1824_s23  ;;  %1486 = vrot.lane.b32.xlu1 %v2673_v21, %s1822_s19 }
 0x837   :  { %1488 = vrot.lane.b32.xlu1 %v2675_v42, %s1822_s19  ;;  %1436 = vrot.lane.b32.xlu0 %v2681_v59, %s1824_s23 }
 0x83b   :  { %1416 = vrot.lane.b32.xlu0 %v2675_v42, %s1825_s26  ;;  %1484 = vrot.lane.b32.xlu1 %v2681_v59, %s1822_s19 }
 0x83f   :  { %1412 = vrot.lane.b32.xlu0 %v2681_v59, %s1825_s26  ;;  %1462 = vrot.lane.b32.xlu1 %v2673_v21, %s1823_s22 }
 0x843   :  { %1384 = vrot.lane.b32.xlu0 %v2681_v59, %s1826_s0  ;;  %1464 = vrot.lane.b32.xlu1 %v2675_v42, %s1823_s22 }
 0x847   :  { %1418 = vrot.lane.b32.xlu0 %v2699_v10, %s1825_s26  ;;  %1460 = vrot.lane.b32.xlu1 %v2681_v59, %s1823_s22 }
 0x84b   :  { %1360 = vrot.lane.b32.xlu0 %v2681_v59, %s1827_s27  ;;  %1438 = vrot.lane.b32.xlu1 %v2673_v21, %s1824_s23 }
 0x84f   :  { %1366 = vrot.lane.b32.xlu0 %v2699_v10, %s1827_s27  ;;  %1490 = vrot.lane.b32.xlu1 %v2699_v10, %s1822_s19 }
 0x853   :  { %1338 = vrot.lane.b32.xlu0 %v2673_v21, %s1828_s28  ;;  %1414 = vrot.lane.b32.xlu1 %v2673_v21, %s1825_s26 }
 0x857   :  { %1342 = vrot.lane.b32.xlu0 %v2699_v10, %s1828_s28  ;;  %1466 = vrot.lane.b32.xlu1 %v2699_v10, %s1823_s22 }
 0x85b   :  { %1314 = vrot.lane.b32.xlu0 %v2673_v21, %s1830_s29  ;;  %1442 = vrot.lane.b32.xlu1 %v2699_v10, %s1824_s23 }
 0x85f   :  { %1318 = vrot.lane.b32.xlu0 %v2699_v10, %s1830_s29  ;;  %1386 = vrot.lane.b32.xlu1 %v2673_v21, %s1826_s0 }
 0x863   :  { %1316 = vrot.lane.b32.xlu0 %v2675_v42, %s1830_s29  ;;  %1390 = vrot.lane.b32.xlu1 %v2699_v10, %s1826_s0 }
 0x867   :  { %1362 = vrot.lane.b32.xlu1 %v2673_v21, %s1827_s27 }
 0x86b   :  { %1336 = vrot.lane.b32.xlu1 %v2681_v59, %s1828_s28 }
 0x86f   :  { %1388 = vrot.lane.b32.xlu1 %v2675_v42, %s1826_s0 }
 0x873   :  { %1312 = vrot.lane.b32.xlu1 %v2681_v59, %s1830_s29 }
 0x877   :  { %1364 = vrot.lane.b32.xlu1 %v2675_v42, %s1827_s27 }
 0x87b   :  { %1340 = vrot.lane.b32.xlu1 %v2675_v42, %s1828_s28 }
 0x8a5   :  { %v2745_v9 = vpop.permute.xlu0 %1440  ;;  %v1487_v5 = vpop.permute.xlu1 %1486 }
 0x8a9   :  { %v1489_v7 = vpop.permute.xlu1 %1488  ;;  %v1437_v35 = vpop.permute.xlu0 %1436 }
 0x8aa   :  { %v1493_v19 = vsel %vm210_vm0, %v1487_v5, %v1489_v7 }
 0x8ab   :  { %v1501_v56 = vmul.f32 %v1497_v63, %v1493_v19 }
 0x8ad   :  { %1563 = vmatprep.subr.mxu0 %v1501_v56  ;;  %v1485_v8 = vpop.permute.xlu1 %1484  ;;  %v1417_v48 = vpop.permute.xlu0 %1416 }
 0x8ae   :  { %v1494_v0 = vsel %vm210_vm0, %v1485_v8, %v1487_v5 }
 0x8af   :  { %v1500_v23 = vmul.f32 %v1496_v13, %v1494_v0 }
 0x8b1   :  { %1564 = vmatpush1.msra.mxu0 %v1500_v23  ;;  %v1463_v38 = vpop.permute.xlu1 %1462  ;;  %v1413_v22 = vpop.permute.xlu0 %1412 }
 0x8b5   :  { %v1465_v34 = vpop.permute.xlu1 %1464  ;;  %v1385_v4 = vpop.permute.xlu0 %1384 }
 0x8b6   :  { %v1469_v37 = vsel %vm185_vm1, %v1463_v38, %v1465_v34 }
 0x8b7   :  { %v1477_v18 = vmul.f32 %v1469_v37, %v2498_v29 }
 0x8b9   :  { %1565 = vmatprep.subr.mxu0 %v1477_v18  ;;  %v1461_v25 = vpop.permute.xlu1 %1460  ;;  %v1419_v44 = vpop.permute.xlu0 %1418 }
 0x8ba   :  { %v1470_v3 = vsel %vm185_vm1, %v1461_v25, %v1463_v38  ;;  %v1423_v5 = vsel %vm135_vm3, %v1419_v44, %v1413_v22 }
 0x8bb   :  { %v1476_v54 = vmul.f32 %v1472_v61, %v1470_v3  ;;  %v1431_v19 = vmul.f32 %v1427_v14, %v1423_v5 }
 0x8bd   :  { %1566 = vmatpush1.msra.mxu0 %v1476_v54  ;;  %v1439_v15 = vpop.permute.xlu1 %1438  ;;  %v1361_v11 = vpop.permute.xlu0 %1360 }
 0x8be   :  { %v1445_v29 = vsel %vm160_vm2, %v1439_v15, %v2745_v9  ;;  %v1446_v36 = vsel %vm160_vm2, %v1437_v35, %v1439_v15 }
 0x8bf   :  { %v1452_v30 = vmul.f32 %v1448_v49, %v1446_v36  ;;  %v1453_v50 = vmul.f32 %v1445_v29, %v2509_v12  ;;  %v1424_v12 = vld [vmem:[%s2910_s3 + $0xa0] sm:$0xff]  ;;  %v1325_v36 = vld [vmem:[%s2910_s3 + $0x8] sm:$0xff] }
 0x8c1   :  { %1567 = vmatprep.subr.mxu0 %v1453_v50  ;;  %v1491_v58 = vpop.permute.xlu1 %1490  ;;  %v2798_v55 = vpop.permute.xlu0 %1366 }
 0x8c2   :  { %v1492_v52 = vsel %vm210_vm0, %v1489_v7, %v1491_v58  ;;  %v1495_v32 = vsel %vm210_vm0, %v1491_v58, %v1485_v8  ;;  %1568 = vmatpush1.msra.mxu0 %v1452_v30 }
 0x8c3   :  { %v1502_v40 = vmul.f32 %v1498_v57, %v1492_v52  ;;  %v1503_v60 = vmul.f32 %v1495_v32, %v2523_v39  ;;  %v1374_v52 = vld [vmem:[%s2910_s3 + $0x50] sm:$0xff]  ;;  %v1375_v32 = vld [vmem:[%s2910_s3 + $0x58] sm:$0xff] }
 0x8c5   :  { %1634 = vmatprep.subr.mxu1 %v1503_v60  ;;  %v1415_v1 = vpop.permute.xlu1 %1414 }
 0x8c6   :  { %v1421_v46 = vsel %vm135_vm3, %v1415_v1, %v1417_v48  ;;  %v1422_v20 = vsel %vm135_vm3, %v1413_v22, %v1415_v1  ;;  %1635 = vmatpush1.msra.mxu1 %v1502_v40  ;;  %v1781_v40 = vld [vmem:[%s2911_s1 + $0x18] sm:$0xff] }
 0x8c7   :  { %v1428_v24 = vmul.f32 %v1424_v12, %v1422_v20  ;;  %v1429_v43 = vmul.f32 %v1421_v46, %v2534_v51 }
 0x8c9   :  { %1569 = vmatprep.subr.mxu0 %v1429_v43  ;;  %v1467_v28 = vpop.permute.xlu1 %1466  ;;  %v1351_v43 = vld [vmem:[%s2910_s3 + $0x38] sm:$0xff] }
 0x8ca   :  { %v1468_v39 = vsel %vm185_vm1, %v1465_v34, %v1467_v28  ;;  %v1471_v53 = vsel %vm185_vm1, %v1467_v28, %v1461_v25  ;;  %1570 = vmatpush1.msra.mxu0 %v1428_v24  ;;  %v1350_v24 = vld [vmem:[%s2910_s3 + $0x30] sm:$0xff] }
 0x8cb   :  { %v1478_v41 = vmul.f32 %v1468_v39, %v2545_v33  ;;  %v1479_v62 = vmul.f32 %v1471_v53, %v2550_v31  ;;  %1571 = vmatprep.subr.mxu0 %v2673_v21  ;;  %v1426_v21 = vld [vmem:[%s2910_s3 + $0xb0] sm:$0xff]  ;;  %v1327_v39 = vld [vmem:[%s2910_s3 + $0x18] sm:$0xff] }
 0x8cc   :  { %1572 = vmatpush1.msra.mxu0 %v2681_v59  ;;  %v1420_v59 = vsel %vm135_vm3, %v1417_v48, %v1419_v44  ;;  %v1372_v48 = vld [vmem:[%s2910_s3 + $0x40] sm:$0xff] }
 0x8cd   :  { %1636 = vmatprep.subr.mxu1 %v1479_v62  ;;  %v1443_v51 = vpop.permute.xlu1 %1442  ;;  %v1430_v13 = vmul.f32 %v1426_v21, %v1420_v59 }
 0x8ce   :  { %v1444_v33 = vsel %vm160_vm2, %v2745_v9, %v1443_v51  ;;  %v1447_v31 = vsel %vm160_vm2, %v1443_v51, %v1437_v35  ;;  %1637 = vmatpush1.msra.mxu1 %v1478_v41  ;;  %v2819_v35 = vpop.permute.xlu0 %1338 }
 0x8cf   :  { %v1454_v63 = vmul.f32 %v1444_v33, %v2563_v16  ;;  %v1455_v7 = vmul.f32 %v1447_v31, %v2568_v17 }
 0x8d1   :  { %1638 = vmatprep.subr.mxu1 %v1455_v7  ;;  %v1387_v56 = vpop.permute.xlu1 %1386 }
 0x8d2   :  { %v1394_v9 = vsel %vm106_vm4, %v1385_v4, %v1387_v56  ;;  %1639 = vmatpush1.msra.mxu1 %v1454_v63  ;;  %v1343_v23 = vpop.permute.xlu0 %1342 }
 0x8d3   :  { %v1401_v8 = vmul.f32 %v1394_v9, %v2586_v26  ;;  %1640 = vmatprep.subr.mxu1 %v1431_v19  ;;  %v1371_v26 = vsel %vm81_vm5, %v2798_v55, %v1361_v11  ;;  %v1711_v9 = vld [vmem:[%s2912_s2] sm:$0xff] }
 0x8d4   :  { %1641 = vmatpush1.msra.mxu1 %v1430_v13  ;;  %v1376_v34 = vmul.f32 %v1372_v48, %v1371_v26 }
 0x8d5   :  { %1573 = vmatprep.subr.mxu0 %v1401_v8  ;;  %1642 = vmatprep.subr.mxu1 %v2699_v10  ;;  %v1391_v16 = vpop.permute.xlu1 %1390 }
 0x8d6   :  { %v1395_v17 = vsel %vm106_vm4, %v1391_v16, %v1385_v4  ;;  %1643 = vmatpush1.msra.mxu1 %v2675_v42  ;;  %v1315_v61 = vpop.permute.xlu0 %1314 }
 0x8d7   :  { %v1400_v0 = vmul.f32 %v1395_v17, %v2597_v47  ;;  %v1348_v47 = vld [vmem:[%s2910_s3 + $0x20] sm:$0xff] }
 0x8d9   :  { %1574 = vmatpush1.msra.mxu0 %v1400_v0  ;;  %v1363_v38 = vpop.permute.xlu1 %1362 }
 0x8da   :  { %v1370_v10 = vsel %vm81_vm5, %v1361_v11, %v1363_v38  ;;  %v1319_v30 = vpop.permute.xlu0 %1318 }
 0x8db   :  { %v1377_v22 = vmul.f32 %v1370_v10, %v2608_v2  ;;  %v1398_v2 = vld [vmem:[%s2910_s3 + $0x70] sm:$0xff] }
 0x8dd   :  { %1575 = vmatprep.subr.mxu0 %v1377_v22  ;;  %v1337_v42 = vpop.permute.xlu1 %1336 }
 0x8de   :  { %v1346_v37 = vsel %vm56_vm6, %v1337_v42, %v2819_v35  ;;  %v1347_v18 = vsel %vm56_vm6, %v1343_v23, %v1337_v42  ;;  %1576 = vmatpush1.msra.mxu0 %v1376_v34  ;;  %v1317_v46 = vpop.permute.xlu0 %1316 }
 0x8df   :  { %v1352_v25 = vmul.f32 %v1348_v47, %v1347_v18  ;;  %v1353_v3 = vmul.f32 %v1346_v37, %v2620_v45  ;;  %v1324_v45 = vld [vmem:[%s2910_s3] sm:$0xff]  ;;  %v1320_v53 = vsel %vm31_vm7, %v1317_v46, %v1319_v30  ;;  %v1321_v51 = vsel %vm31_vm7, %v1315_v61, %v1317_v46 }
 0x8e0   :  { %v1331_v33 = vmul.f32 %v1327_v39, %v1320_v53 }
 0x8e1   :  { %1577 = vmatprep.subr.mxu0 %v1353_v3  ;;  %v1389_v4 = vpop.permute.xlu1 %1388 }
 0x8e2   :  { %v1392_v54 = vsel %vm106_vm4, %v1389_v4, %v1391_v16  ;;  %v1393_v49 = vsel %vm106_vm4, %v1387_v56, %v1389_v4  ;;  %1578 = vmatpush1.msra.mxu0 %v1352_v25 }
 0x8e3   :  { %v1402_v15 = vmul.f32 %v1398_v2, %v1393_v49  ;;  %v1403_v29 = vmul.f32 %v1392_v54, %v2631_v27 }
 0x8e5   :  { %1644 = vmatprep.subr.mxu1 %v1403_v29  ;;  %v1313_v50 = vpop.permute.xlu1 %1312 }
 0x8e6   :  { %v1322_v57 = vsel %vm31_vm7, %v1313_v50, %v1315_v61  ;;  %v1323_v44 = vsel %vm31_vm7, %v1319_v30, %v1313_v50  ;;  %1645 = vmatpush1.msra.mxu1 %v1402_v15 }
 0x8e7   :  { %v1328_v58 = vmul.f32 %v1324_v45, %v1323_v44  ;;  %v1329_v27 = vmul.f32 %v1325_v36, %v1322_v57 }
 0x8e9   :  { %1579 = vmatprep.subr.mxu0 %v1329_v27  ;;  %v1365_v60 = vpop.permute.xlu1 %1364 }
 0x8ea   :  { %v1368_v12 = vsel %vm81_vm5, %v1365_v60, %v2798_v55  ;;  %v1369_v1 = vsel %vm81_vm5, %v1363_v38, %v1365_v60  ;;  %1580 = vmatpush1.msra.mxu0 %v1328_v58  ;;  %v1326_v55 = vld [vmem:[%s2910_s3 + $0x10] sm:$0xff] }
 0x8eb   :  { %v1378_v20 = vmul.f32 %v1374_v52, %v1369_v1  ;;  %v1379_v11 = vmul.f32 %v1375_v32, %v1368_v12  ;;  %1782 = vmatmul.mubr.msk.f32.vlgmr.msra.gmra.mxu0 %vm264_vm8, %v1781_v40  ;;  %v1330_v31 = vmul.f32 %v1326_v55, %v1321_v51 }
 0x8ed   :  { %1646 = vmatprep.subr.mxu1 %v1379_v11  ;;  %v1341_v28 = vpop.permute.xlu1 %1340 }
 0x8ee   :  { %v1344_v41 = vsel %vm56_vm6, %v1341_v28, %v1343_v23  ;;  %v1345_v62 = vsel %vm56_vm6, %v2819_v35, %v1341_v28  ;;  %1647 = vmatpush1.msra.mxu1 %v1378_v20  ;;  %v1838_v35 = vmov 7  }
 0x8ef   :  { %v1354_v14 = vmul.f32 %v1350_v24, %v1345_v62  ;;  %v1355_v5 = vmul.f32 %v1351_v43, %v1344_v41  ;;  %1808 = vset.pattern.permute.xlu1 %v1838_v35 }
 0x8f1   :  { %1648 = vmatprep.subr.mxu1 %v1355_v5 }
 0x8f2   :  { %1649 = vmatpush1.msra.mxu1 %v1354_v14 }
 0x8f3   :  { %1650 = vmatprep.subr.mxu1 %v1331_v33 }
 0x8f4   :  { %1651 = vmatpush1.msra.mxu1 %v1330_v31 }
 0x8f5   :  { %1783 = vmatmul.mubr.msk.f32.vlgmr.msra.gmra.mxu1 %vm264_vm8, %v1781_v40 }
 0x9ab   :  { %v1615_v21 = vpop.f32.mrf.mxu0 }
 0x9ad   :  { %v1617_v59 = vpop.f32.mrf.mxu0 }
 0x9ae   :  { %v1691_v63 = vadd.f32 %v1617_v59, %v1615_v21 }
 0x9b5   :  { %v1686_v7 = vpop.f32.mrf.mxu1 }
 0x9b6   :  { %v1692_v19 = vadd.f32 %v1691_v63, %v1686_v7 }
 0x9b7   :  { %v1688_v56 = vpop.f32.mrf.mxu1 }
 0x9b8   :  { %v1693_v13 = vadd.f32 %v1692_v19, %v1688_v56 }
 0x9ba   :  { %1694 = vadd.xlane.f32.xlu1 %v1693_v13 }
 0x9cb   :  { %1728 = vperm.xlu1 %1808, %v1711_v9  }
 0xa43   :  { %v1695_v8 = vpop.xlane.xlu1 %1694 }
 0xa44   :  { %v1696_v16 = vmul.f32 0.001953125, %v1695_v8 }
 0xa46   :  { %v1697_v17 = vsub.f32 %v1615_v21, %v1696_v16  ;;  %v1698_v0 = vsub.f32 %v1617_v59, %v1696_v16  ;;  %v1699_v48 = vsub.f32 %v1686_v7, %v1696_v16  ;;  %v1700_v26 = vsub.f32 %v1688_v56, %v1696_v16 }
 0xa47   :  { %v1729_v15 = vpop.permute.xlu1 %1728 }
 0xa48   :  { %v1701_v23 = vmul.f32 %v1697_v17, %v1697_v17  ;;  %v1702_v38 = vmul.f32 %v1698_v0, %v1698_v0  ;;  %v1703_v10 = vmul.f32 %v1699_v48, %v1699_v48  ;;  %v1704_v34 = vmul.f32 %v1700_v26, %v1700_v26 }
 0xa4a   :  { %v1705_v22 = vadd.f32 %v1702_v38, %v1701_v23 }
 0xa4c   :  { %v1706_v47 = vadd.f32 %v1705_v22, %v1703_v10 }
 0xa4e   :  { %v1707_v42 = vadd.f32 %v1706_v47, %v1704_v34 }
 0xa50   :  { %1708 = vadd.xlane.f32.xlu0 %v1707_v42 }
 0xa66   :  { %1720 = vperm.xlu0 %1807, %v1711_v9  }
 0xa6a   :  { %1809 = vset.pattern.permute.xlu0 %v1838_v35 }
 0xad9   :  { %v1709_v37 = vpop.xlane.xlu0 %1708 }
 0xada   :  { %v1710_v18 = vmul.f32 0.001953125, %v1709_v37 }
 0xadc   :  { %v1712_v61 = vadd.f32 1e-05, %v1710_v18 }
 0xade   :  { %1816 = vrsqrt.f32 %v1712_v61 }
 0xae1   :  { %v1721_v3 = vpop.permute.xlu0 %1720 }
 0xaeb   :  { %v1817_v25 = vpop.eup %1816 }
 0xaec   :  { %v1714_v2 = vmul.f32 %v1817_v25, %v1697_v17  ;;  %v1715_v4 = vmul.f32 %v1817_v25, %v1698_v0  ;;  %v1716_v54 = vmul.f32 %v1817_v25, %v1699_v48  ;;  %v1717_v49 = vmul.f32 %v1817_v25, %v1700_v26 }
 0xaee   :  { %v1723_v29 = vmul.f32 %v1721_v3, %v1714_v2  ;;  %v1724_v45 = vmul.f32 %v1721_v3, %v1715_v4  ;;  %v1725_v36 = vmul.f32 %v1721_v3, %v1716_v54  ;;  %v1726_v30 = vmul.f32 %v1721_v3, %v1717_v49 }
 0xaf0   :  { %v1731_v50 = vadd.f32 %v1729_v15, %v1723_v29  ;;  %v1732_v57 = vadd.f32 %v1729_v15, %v1724_v45  ;;  %v1733_v44 = vadd.f32 %v1729_v15, %v1725_v36  ;;  %v1734_v58 = vadd.f32 %v1729_v15, %v1726_v30 }
 0xaf2   :  { %v1737_v27 = vmax.f32 %v1733_v44, 0.0  ;;  %v1738_v52 = vmax.f32 %v1734_v58, 0.0  ;;  %v1735_v32 = vmax.f32 %v1731_v50, 0.0  ;;  %v1736_v40 = vmax.f32 %v1732_v57, 0.0 }
 0xaf4   :  { %v1742_v60 = vadd.f32 %v1738_v52, %v1737_v27  ;;  %v1739_v12 = vadd.f32 %v1736_v40, %v1735_v32 }
 0xaf6   :  { %1743 = vadd.xlane.f32.xlu0 %v1742_v60  ;;  %1740 = vadd.xlane.f32.xlu1 %v1739_v12 }
 0xb7f   :  { %v1744_v1 = vpop.xlane.xlu0 %1743  ;;  %v1741_v46 = vpop.xlane.xlu1 %1740 }
 0xb80   :  { %v1746_v20 = vsel %vm1745_vm9, %v1741_v46, %v1744_v1 }
 0xb81   :  { %v1747_v11 = vmul.f32 0.00390625, %v1746_v20 }
 0xb83   :  { %v1749_v24 = vsel %vm1748_vm10, %v1747_v11, -inf }
 0xb84   :  { %v1750_v43 = vrot.slane %v1749_v24, 4 }
 0xb86   :  { %v1751_v28 = vmax.f32 %v1749_v24, %v1750_v43 }
 0xb88   :  { %v1752_v39 = vrot.slane %v1751_v28, 2 }
 0xb8a   :  { %v1753_v53 = vmax.f32 %v1751_v28, %v1752_v39 }
 0xb8c   :  { %v1754_v41 = vrot.slane %v1753_v53, 1 }
 0xb8e   :  { %v1755_v62 = vmax.f32 %v1753_v53, %v1754_v41 }
 0xb90   :  { %v1756_v55 = vsub.f32 %v1747_v11, %v1755_v62 }
 0xb92   :  { %v1757_v51 = vmul.f32 1.442695, %v1756_v55 }
 0xb94   :  { %1818 = vpow2.f32 %v1757_v51 }
 0xba1   :  { %v1819_v14 = vpop.eup %1818 }
 0xba2   :  { %v1759_v5 = vsel %vm1748_vm10, %v1819_v14, 0.0 }
 0xba3   :  { %v1760_v33 = vrot.slane %v1759_v5, 4 }
 0xba5   :  { %v1761_v31 = vadd.f32 %v1760_v33, %v1759_v5 }
 0xba7   :  { %v1762_v21 = vrot.slane %v1761_v31, 2 }
 0xba9   :  { %v1763_v59 = vadd.f32 %v1762_v21, %v1761_v31 }
 0xbab   :  { %v1764_v63 = vrot.slane %v1763_v59, 1 }
 0xbad   :  { %v1765_v7 = vadd.f32 %v1764_v63, %v1763_v59 }
 0xbaf   :  { %1820 = vrcp.f32 %v1765_v7 }
 0xbbc   :  { %v1821_v19 = vpop.eup %1820 }
 0xbbd   :  { %v1767_v56 = vmul.f32 %v1821_v19, %v1819_v14 }
 0xbbf   :  { %1768 = vst.msk [vmem:[%s2913_s4] sm:$0xff] %vm1748_vm10, %v1767_v56 }

</bundles_post_ra>
